<compile_context>
chip_gen: v7x
topology: tpu7x:2x2x1
jax: 0.10.0
libtpu: 0.0.40
codegen_flags: <defaults>
</compile_context>

<pallas_src>
import math

import jax
import jax.numpy as jnp
from jax.experimental import pallas as pl
from jax.experimental.pallas import tpu as pltpu

# Module hyper-parameters (PyTorch defaults) and small data shapes.
DX, DH, DFF, N, M = 2, 128, 512, 3, 8
DK = DH // M            # = DV = 16, M*DK = 128
B, L = 2, 8
BL = B * L
EPS = 1e-5


def encoder_kernel(x_ref, wh_ref, bh_ref, wq_ref, wk_ref, wv_ref, wo_ref,
                   wbn_ref, bbn_ref, wff0_ref, bff0_ref, wff1_ref, bff1_ref,
                   out_ref, h_ref):
    n = pl.program_id(0)

    # ---- layer 0 only: input projection (contraction dim DX=2 -> VPU FMAs) --
    @pl.when(n == 0)
    def _():
        x = x_ref[...]                                            # (B, L, DX)
        h3 = jnp.broadcast_to(bh_ref[...][None], (B, L, DH))
        for d in range(DX):
            h3 = h3 + x[:, :, d:d + 1] * wh_ref[d:d + 1, :][None]
        h_ref[...] = h3.reshape(BL, DH)

    w_bn = wbn_ref[0]                                             # (1, DH)
    b_bn = bbn_ref[0]                                             # (1, DH)

    def bn_affine(yf):
        # BatchNorm1d(num_features=L, affine=False), training mode: per
        # sequence position normalize over (batch, feature) with biased
        # two-pass variance, eps=1e-5; the BN-affine (w_bn, b_bn) is fused
        # into a single FMA pass over the activation.
        y = yf.reshape(B, L, DH)
        mean = jnp.mean(y, axis=(0, 2), keepdims=True)            # (1, L, 1)
        yc = y - mean
        var = jnp.mean(yc * yc, axis=(0, 2), keepdims=True)       # (1, L, 1)
        scale = w_bn[None] * jax.lax.rsqrt(var + EPS)             # (1, L, DH)
        return (yc * scale + b_bn[None]).reshape(BL, DH)

    h = h_ref[...]                                                # (BL, DH) f32
    hb = h.astype(jnp.bfloat16)

    # ---- multi-head attention: fused lane-dense projections (bf16 MXU) ----
    # One (BL,128)@(128,128) matmul per projection; 1/sqrt(dk) folded into wq.
    q3 = jnp.dot(hb, wq_ref[0],
                 preferred_element_type=jnp.float32).reshape(B, L, M * DK)
    k3 = jnp.dot(hb, wk_ref[0],
                 preferred_element_type=jnp.float32).reshape(B, L, M * DK)
    v3 = jnp.dot(hb, wv_ref[0],
                 preferred_element_type=jnp.float32).reshape(B, L, M * DK)

    # Per-head attention core (scores are intrinsically tiny (L,L)=(8,8));
    # head outputs are accumulated in registers and concatenated lane-dense so
    # the output projection is a single 128-deep matmul (no VMEM scratch,
    # no masked 16-lane stores).
    heads = []
    for m in range(M):
        sl = slice(m * DK, (m + 1) * DK)
        q = q3[:, :, sl]                                          # (B, L, DK)
        k = k3[:, :, sl]
        v = v3[:, :, sl]
        u = jnp.einsum("blk,bnk->bln", q, k,
                       preferred_element_type=jnp.float32)
        u = u - jnp.max(u, axis=2, keepdims=True)                 # softmax(dim=2)
        e = jnp.exp(u)
        s = e * pl.reciprocal(jnp.sum(e, axis=2, keepdims=True), approx=True)
        heads.append(jnp.einsum("bln,bnk->blk", s, v,
                                preferred_element_type=jnp.float32))
    t = jnp.concatenate(heads, axis=2).reshape(BL, M * DK)

    # Output projection: the head sum is the contraction of one
    # (BL, M*DK)@(M*DK, DH) matmul.
    h_mha = jnp.dot(t.astype(jnp.bfloat16), wo_ref[0],
                    preferred_element_type=jnp.float32)

    h_bn = bn_affine(h + h_mha)

    # ---- position-wise feed forward (bf16 MXU operands, f32 accumulation) --
    h0 = jnp.dot(h_bn.astype(jnp.bfloat16), wff0_ref[0],
                 preferred_element_type=jnp.float32) + bff0_ref[0]
    h0 = jnp.maximum(h0, 0.0)
    h1 = jnp.dot(h0.astype(jnp.bfloat16), wff1_ref[0],
                 preferred_element_type=jnp.float32) + bff1_ref[0]

    h_new = bn_affine(h_bn + h1)
    h_ref[...] = h_new                                            # carry to next layer

    @pl.when(n == pl.num_programs(0) - 1)
    def _():
        out_ref[...] = h_new.reshape(B, L, DH)


def _fuse_params(params):
    """Host-side (one-time) repack: per-head weights -> per-layer fused bf16 weights."""
    (wh, bh, wq, wk, wv, wo, wbn, bbn, wff0, bff0, wff1, bff1) = params

    def fuse_heads_in(w):   # (N*M, DH, DK) -> (N, DH, M*DK), head-major columns
        return jnp.transpose(w.reshape(N, M, DH, DK), (0, 2, 1, 3)).reshape(N, DH, M * DK)

    bf16 = jnp.bfloat16
    wq_f = (fuse_heads_in(wq) * (1.0 / math.sqrt(DK))).astype(bf16)  # fold 1/sqrt(dk)
    wk_f = fuse_heads_in(wk).astype(bf16)
    wv_f = fuse_heads_in(wv).astype(bf16)
    wo_f = wo.reshape(N, M * DK, DH).astype(bf16)    # (N*M, DK, DH) -> (N, M*DK, DH)
    wff0_f = wff0.astype(bf16)
    wff1_f = wff1.astype(bf16)
    # BN params / biases stay f32; add a singleton axis so each per-layer slice
    # is a clean (1, 1, D) block (no in-kernel dynamic indexing).
    wbn_r = wbn.reshape(N, 1, DH)
    bbn_r = bbn.reshape(N, 1, DH)
    bff0_r = bff0.reshape(N, 1, DFF)
    bff1_r = bff1.reshape(N, 1, DH)
    return (wh, bh, wq_f, wk_f, wv_f, wo_f, wbn_r, bbn_r, wff0_f, bff0_r,
            wff1_f, bff1_r)


def encoder_forward(x, params):
    (wh, bh, wq_f, wk_f, wv_f, wo_f, wbn_r, bbn_r, wff0_f, bff0_r,
     wff1_f, bff1_r) = _fuse_params(params)

    def full(shape):           # whole array resident, constant block index
        return pl.BlockSpec(shape, lambda n, _s=shape: (0,) * len(_s))

    def layer3(d0, d1):        # per-layer (1, d0, d1) block, pipelined over layers
        return pl.BlockSpec((1, d0, d1), lambda n: (n, 0, 0))

    grid_spec = pltpu.PrefetchScalarGridSpec(
        num_scalar_prefetch=0,
        grid=(N,),
        in_specs=[
            full((B, L, DX)),        # x
            full((DX, DH)),          # wh
            full((1, DH)),           # bh
            layer3(DH, M * DK),      # wq (fused heads, bf16)
            layer3(DH, M * DK),      # wk
            layer3(DH, M * DK),      # wv
            layer3(M * DK, DH),      # wo
            layer3(1, DH),           # w_bn
            layer3(1, DH),           # b_bn
            layer3(DH, DFF),         # wff0 (bf16)
            layer3(1, DFF),          # bff0
            layer3(DFF, DH),         # wff1 (bf16)
            layer3(1, DH),           # bff1
        ],
        out_specs=pl.BlockSpec((B, L, DH), lambda n: (0, 0, 0)),
        scratch_shapes=[pltpu.VMEM((BL, DH), jnp.float32)],   # carried activation h
    )
    return pl.pallas_call(
        encoder_kernel,
        out_shape=jax.ShapeDtypeStruct((B, L, DH), jnp.float32),
        grid_spec=grid_spec,
        compiler_params=pltpu.CompilerParams(
            dimension_semantics=("arbitrary",)),
    )(x, wh, bh, wq_f, wk_f, wv_f, wo_f, wbn_r, bbn_r, wff0_f, bff0_r,
      wff1_f, bff1_r)


# ---------- pure-JAX reference (original per-head f32 math, outside Pallas) ----------
def encoder_reference(x, params):
    (wh, bh, wq, wk, wv, wo, wbn, bbn, wff0, bff0, wff1, bff1) = params
    h = jnp.einsum("bld,dh->blh", x, wh) + bh[None]

    def bn(y):
        mean = jnp.mean(y, axis=(0, 2), keepdims=True)
        var = jnp.mean((y - mean) ** 2, axis=(0, 2), keepdims=True)
        return (y - mean) / jnp.sqrt(var + EPS)

    for n in range(N):
        h_mha = jnp.zeros_like(h)
        for m in range(M):
            idx = n * M + m
            q = jnp.einsum("blh,hk->blk", h, wq[idx])
            k = jnp.einsum("blh,hk->blk", h, wk[idx])
            v = jnp.einsum("blh,hk->blk", h, wv[idx])
            u = jnp.einsum("blk,bmk->blm", q, k) / math.sqrt(DK)
            s = jax.nn.softmax(u, axis=2)
            t = jnp.einsum("blm,bmk->blk", s, v)
            h_mha = h_mha + jnp.einsum("blk,kh->blh", t, wo[idx])
        h_bn = wbn[n] * bn(h + h_mha) + bbn[n]
        h0 = jax.nn.relu(jnp.einsum("blh,hf->blf", h_bn, wff0[n]) + bff0[n])
        h1 = jnp.einsum("blf,fh->blh", h0, wff1[n]) + bff1[n]
        h = wbn[n] * bn(h_bn + h1) + bbn[n]
    return h


def init_params(key):
    ks = jax.random.split(key, 12)
    sc = 0.1
    wh = jax.random.normal(ks[0], (DX, DH), jnp.float32) * sc
    bh = jax.random.normal(ks[1], (1, DH), jnp.float32) * sc
    wq = jax.random.normal(ks[2], (N * M, DH, DK), jnp.float32) * sc
    wk = jax.random.normal(ks[3], (N * M, DH, DK), jnp.float32) * sc
    wv = jax.random.normal(ks[4], (N * M, DH, DK), jnp.float32) * sc
    wo = jax.random.normal(ks[5], (N * M, DK, DH), jnp.float32) * sc
    wbn = jax.random.normal(ks[6], (N, DH), jnp.float32)          # torch.randn
    bbn = jax.random.normal(ks[7], (N, DH), jnp.float32)          # torch.randn
    wff0 = jax.random.normal(ks[8], (N, DH, DFF), jnp.float32) * sc
    bff0 = jax.random.normal(ks[9], (N, DFF), jnp.float32) * sc
    wff1 = jax.random.normal(ks[10], (N, DFF, DH), jnp.float32) * sc
    bff1 = jax.random.normal(ks[11], (N, DH), jnp.float32) * sc
    return (wh, bh, wq, wk, wv, wo, wbn, bbn, wff0, bff0, wff1, bff1)


if __name__ == "__main__":
    key = jax.random.PRNGKey(0)
    pkey, xkey = jax.random.split(key)
    params = init_params(pkey)
    x = jax.random.normal(xkey, (B, L, DX), jnp.float32)

    out = jax.block_until_ready(encoder_forward(x, params))
    ref = jax.block_until_ready(encoder_reference(x, params))

    assert out.shape == (B, L, DH)
    assert bool(jnp.all(jnp.isfinite(out)))
    # bf16 MXU operands (f32 accumulation) vs exact-f32 reference: BN
    # renormalization at every sub-layer keeps the error well inside this.
    assert bool(jnp.allclose(out, ref, rtol=5e-2, atol=5e-2)), "mismatch vs reference"
    print("KERNEL_OK")
</pallas_src>

<mosaic_0001>
module attributes {stable_mosaic.version = 11 : i64} {
  func.func @encoder_kernel(%arg0: i32, %arg1: memref<2x8x2xf32, #tpu.memory_space<vmem>>, %arg2: memref<2x128xf32, #tpu.memory_space<vmem>>, %arg3: memref<1x128xf32, #tpu.memory_space<vmem>>, %arg4: memref<1x128x128xbf16, #tpu.memory_space<vmem>>, %arg5: memref<1x128x128xbf16, #tpu.memory_space<vmem>>, %arg6: memref<1x128x128xbf16, #tpu.memory_space<vmem>>, %arg7: memref<1x128x128xbf16, #tpu.memory_space<vmem>>, %arg8: memref<1x1x128xf32, #tpu.memory_space<vmem>>, %arg9: memref<1x1x128xf32, #tpu.memory_space<vmem>>, %arg10: memref<1x128x512xbf16, #tpu.memory_space<vmem>>, %arg11: memref<1x1x512xf32, #tpu.memory_space<vmem>>, %arg12: memref<1x512x128xbf16, #tpu.memory_space<vmem>>, %arg13: memref<1x1x128xf32, #tpu.memory_space<vmem>>, %arg14: memref<2x8x128xf32, #tpu.memory_space<vmem>>, %arg15: memref<16x128xf32, #tpu.memory_space<vmem>>) attributes {dimension_semantics = [#tpu.dimension_semantics<arbitrary>], iteration_bounds = array<i64: 3>, scalar_prefetch = 0 : i64, scratch_operands = 1 : i64, tpu.core_type = #tpu.core_type<tc>, window_params = [{pipeline_mode = #tpu.pipeline_mode<synchronous>, transform_indices = @transform_0, window_bounds = array<i64: 2, 8, 2>}, {pipeline_mode = #tpu.pipeline_mode<synchronous>, transform_indices = @transform_1, window_bounds = array<i64: 2, 128>}, {pipeline_mode = #tpu.pipeline_mode<synchronous>, transform_indices = @transform_2, window_bounds = array<i64: 1, 128>}, {transform_indices = @transform_3, window_bounds = array<i64: 1, 128, 128>}, {transform_indices = @transform_4, window_bounds = array<i64: 1, 128, 128>}, {transform_indices = @transform_5, window_bounds = array<i64: 1, 128, 128>}, {transform_indices = @transform_6, window_bounds = array<i64: 1, 128, 128>}, {transform_indices = @transform_7, window_bounds = array<i64: 1, 1, 128>}, {transform_indices = @transform_8, window_bounds = array<i64: 1, 1, 128>}, {transform_indices = @transform_9, window_bounds = array<i64: 1, 128, 512>}, {transform_indices = @transform_10, window_bounds = array<i64: 1, 1, 512>}, {transform_indices = @transform_11, window_bounds = array<i64: 1, 512, 128>}, {transform_indices = @transform_12, window_bounds = array<i64: 1, 1, 128>}, {pipeline_mode = #tpu.pipeline_mode<synchronous>, transform_indices = @transform_13, window_bounds = array<i64: 2, 8, 128>}]} {
    %c0_i32 = arith.constant 0 : i32
    %0 = arith.cmpi eq, %arg0, %c0_i32 : i32
    %1 = arith.extui %0 : i1 to i32
    %c0_i32_0 = arith.constant 0 : i32
    %2 = arith.cmpi ne, %1, %c0_i32_0 : i32
    scf.if %2 {
      %c0_83 = arith.constant 0 : index
      %c0_84 = arith.constant 0 : index
      %c0_85 = arith.constant 0 : index
      %221 = vector.load %arg1[%c0_83, %c0_84, %c0_85] : memref<2x8x2xf32, #tpu.memory_space<vmem>>, vector<2x8x2xf32>
      %c0_86 = arith.constant 0 : index
      %c0_87 = arith.constant 0 : index
      %222 = vector.load %arg3[%c0_86, %c0_87] : memref<1x128xf32, #tpu.memory_space<vmem>>, vector<1x128xf32>
      %223 = vector.shape_cast %222 : vector<1x128xf32> to vector<1x1x128xf32>
      %224 = vector.shape_cast %223 : vector<1x1x128xf32> to vector<1x1x128xf32>
      %225 = vector.broadcast %224 : vector<1x1x128xf32> to vector<2x8x128xf32>
      %226 = vector.extract_strided_slice %221 {offsets = [0, 0, 0], sizes = [2, 8, 1], strides = [1, 1, 1]} : vector<2x8x2xf32> to vector<2x8x1xf32>
      %c0_88 = arith.constant 0 : index
      %c0_89 = arith.constant 0 : index
      %227 = vector.load %arg2[%c0_88, %c0_89] : memref<2x128xf32, #tpu.memory_space<vmem>>, vector<1x128xf32>
      %228 = vector.shape_cast %227 : vector<1x128xf32> to vector<1x1x128xf32>
      %229 = vector.broadcast %226 : vector<2x8x1xf32> to vector<2x8x128xf32>
      %230 = vector.broadcast %228 : vector<1x1x128xf32> to vector<2x8x128xf32>
      %231 = arith.mulf %229, %230 : vector<2x8x128xf32>
      %232 = arith.addf %225, %231 : vector<2x8x128xf32>
      %233 = vector.extract_strided_slice %221 {offsets = [0, 0, 1], sizes = [2, 8, 1], strides = [1, 1, 1]} : vector<2x8x2xf32> to vector<2x8x1xf32>
      %c1 = arith.constant 1 : index
      %c0_90 = arith.constant 0 : index
      %234 = vector.load %arg2[%c1, %c0_90] : memref<2x128xf32, #tpu.memory_space<vmem>>, vector<1x128xf32>
      %235 = vector.shape_cast %234 : vector<1x128xf32> to vector<1x1x128xf32>
      %236 = vector.broadcast %233 : vector<2x8x1xf32> to vector<2x8x128xf32>
      %237 = vector.broadcast %235 : vector<1x1x128xf32> to vector<2x8x128xf32>
      %238 = arith.mulf %236, %237 : vector<2x8x128xf32>
      %239 = arith.addf %232, %238 : vector<2x8x128xf32>
      %240 = vector.shape_cast %239 : vector<2x8x128xf32> to vector<16x128xf32>
      %c0_91 = arith.constant 0 : index
      %c0_92 = arith.constant 0 : index
      %241 = vector.load %arg15[%c0_91, %c0_92] : memref<16x128xf32, #tpu.memory_space<vmem>>, vector<16x128xf32>
      tpu.vector_store %arg15[%c0_91, %c0_92], %240 {strides = array<i32>} : memref<16x128xf32, #tpu.memory_space<vmem>>, vector<16x128xf32>,
    } else {
    }
    %c0 = arith.constant 0 : index
    %c0_1 = arith.constant 0 : index
    %c0_2 = arith.constant 0 : index
    %3 = vector.load %arg8[%c0, %c0_1, %c0_2] : memref<1x1x128xf32, #tpu.memory_space<vmem>>, vector<1x1x128xf32>
    %4 = vector.shape_cast %3 : vector<1x1x128xf32> to vector<1x128xf32>
    %c0_3 = arith.constant 0 : index
    %c0_4 = arith.constant 0 : index
    %c0_5 = arith.constant 0 : index
    %5 = vector.load %arg9[%c0_3, %c0_4, %c0_5] : memref<1x1x128xf32, #tpu.memory_space<vmem>>, vector<1x1x128xf32>
    %6 = vector.shape_cast %5 : vector<1x1x128xf32> to vector<1x128xf32>
    %c0_6 = arith.constant 0 : index
    %c0_7 = arith.constant 0 : index
    %7 = vector.load %arg15[%c0_6, %c0_7] : memref<16x128xf32, #tpu.memory_space<vmem>>, vector<16x128xf32>
    %8 = arith.truncf %7 : vector<16x128xf32> to vector<16x128xbf16>
    %c0_8 = arith.constant 0 : index
    %c0_9 = arith.constant 0 : index
    %c0_10 = arith.constant 0 : index
    %9 = vector.load %arg4[%c0_8, %c0_9, %c0_10] : memref<1x128x128xbf16, #tpu.memory_space<vmem>>, vector<1x128x128xbf16>
    %10 = vector.shape_cast %9 : vector<1x128x128xbf16> to vector<128x128xbf16>
    %cst = arith.constant dense<0.000000e+00> : vector<16x128xf32>
    %11 = tpu.matmul %8, %10, %cst {dimension_numbers = #tpu.dot_dimension_numbers<[1], [0], [0], [1], [0, 0, 1, 1], [], []>} : vector<16x128xbf16>, vector<128x128xbf16>, vector<16x128xf32> -> vector<16x128xf32>
    %12 = vector.shape_cast %11 : vector<16x128xf32> to vector<2x8x128xf32>
    %c0_11 = arith.constant 0 : index
    %c0_12 = arith.constant 0 : index
    %c0_13 = arith.constant 0 : index
    %13 = vector.load %arg5[%c0_11, %c0_12, %c0_13] : memref<1x128x128xbf16, #tpu.memory_space<vmem>>, vector<1x128x128xbf16>
    %14 = vector.shape_cast %13 : vector<1x128x128xbf16> to vector<128x128xbf16>
    %cst_14 = arith.constant dense<0.000000e+00> : vector<16x128xf32>
    %15 = tpu.matmul %8, %14, %cst_14 {dimension_numbers = #tpu.dot_dimension_numbers<[1], [0], [0], [1], [0, 0, 1, 1], [], []>} : vector<16x128xbf16>, vector<128x128xbf16>, vector<16x128xf32> -> vector<16x128xf32>
    %16 = vector.shape_cast %15 : vector<16x128xf32> to vector<2x8x128xf32>
    %c0_15 = arith.constant 0 : index
    %c0_16 = arith.constant 0 : index
    %c0_17 = arith.constant 0 : index
    %17 = vector.load %arg6[%c0_15, %c0_16, %c0_17] : memref<1x128x128xbf16, #tpu.memory_space<vmem>>, vector<1x128x128xbf16>
    %18 = vector.shape_cast %17 : vector<1x128x128xbf16> to vector<128x128xbf16>
    %cst_18 = arith.constant dense<0.000000e+00> : vector<16x128xf32>
    %19 = tpu.matmul %8, %18, %cst_18 {dimension_numbers = #tpu.dot_dimension_numbers<[1], [0], [0], [1], [0, 0, 1, 1], [], []>} : vector<16x128xbf16>, vector<128x128xbf16>, vector<16x128xf32> -> vector<16x128xf32>
    %20 = vector.shape_cast %19 : vector<16x128xf32> to vector<2x8x128xf32>
    %21 = vector.extract_strided_slice %12 {offsets = [0, 0, 0], sizes = [2, 8, 16], strides = [1, 1, 1]} : vector<2x8x128xf32> to vector<2x8x16xf32>
    %22 = vector.extract_strided_slice %16 {offsets = [0, 0, 0], sizes = [2, 8, 16], strides = [1, 1, 1]} : vector<2x8x128xf32> to vector<2x8x16xf32>
    %23 = vector.extract_strided_slice %20 {offsets = [0, 0, 0], sizes = [2, 8, 16], strides = [1, 1, 1]} : vector<2x8x128xf32> to vector<2x8x16xf32>
    "tpu.trace_start"() <{level = 10 : i32, message = "blk,bnk->bln"}> : () -> ()
    %cst_19 = arith.constant dense<0.000000e+00> : vector<2x8x8xf32>
    %24 = tpu.matmul %21, %22, %cst_19 {dimension_numbers = #tpu.dot_dimension_numbers<[2], [2], [1], [1], [0, 0, 0, 1, 1, 1], [0], [0]>} : vector<2x8x16xf32>, vector<2x8x16xf32>, vector<2x8x8xf32> -> vector<2x8x8xf32>
    "tpu.trace_stop"() : () -> ()
    %cst_20 = arith.constant dense<0xFF800000> : vector<2x8xf32>
    %25 = vector.multi_reduction <maximumf>, %24, %cst_20 [2] : vector<2x8x8xf32> to vector<2x8xf32>
    %26 = vector.shape_cast %25 : vector<2x8xf32> to vector<2x8x1xf32>
    %27 = vector.broadcast %26 : vector<2x8x1xf32> to vector<2x8x8xf32>
    %28 = arith.subf %24, %27 : vector<2x8x8xf32>
    %29 = math.exp %28 : vector<2x8x8xf32>
    %cst_21 = arith.constant dense<0.000000e+00> : vector<2x8xf32>
    %30 = vector.multi_reduction <add>, %29, %cst_21 [2] : vector<2x8x8xf32> to vector<2x8xf32>
    %31 = vector.shape_cast %30 : vector<2x8xf32> to vector<2x8x1xf32>
    %32 = tpu.reciprocal %31 {approx = true} : vector<2x8x1xf32> -> vector<2x8x1xf32>
    %33 = vector.broadcast %32 : vector<2x8x1xf32> to vector<2x8x8xf32>
    %34 = arith.mulf %29, %33 : vector<2x8x8xf32>
    "tpu.trace_start"() <{level = 10 : i32, message = "bln,bnk->blk"}> : () -> ()
    %cst_22 = arith.constant dense<0.000000e+00> : vector<2x8x16xf32>
    %35 = tpu.matmul %34, %23, %cst_22 {dimension_numbers = #tpu.dot_dimension_numbers<[2], [1], [1], [2], [0, 0, 0, 1, 1, 2], [0], [0]>} : vector<2x8x8xf32>, vector<2x8x16xf32>, vector<2x8x16xf32> -> vector<2x8x16xf32>
    "tpu.trace_stop"() : () -> ()
    %36 = vector.extract_strided_slice %12 {offsets = [0, 0, 16], sizes = [2, 8, 16], strides = [1, 1, 1]} : vector<2x8x128xf32> to vector<2x8x16xf32>
    %37 = vector.extract_strided_slice %16 {offsets = [0, 0, 16], sizes = [2, 8, 16], strides = [1, 1, 1]} : vector<2x8x128xf32> to vector<2x8x16xf32>
    %38 = vector.extract_strided_slice %20 {offsets = [0, 0, 16], sizes = [2, 8, 16], strides = [1, 1, 1]} : vector<2x8x128xf32> to vector<2x8x16xf32>
    "tpu.trace_start"() <{level = 10 : i32, message = "blk,bnk->bln"}> : () -> ()
    %cst_23 = arith.constant dense<0.000000e+00> : vector<2x8x8xf32>
    %39 = tpu.matmul %36, %37, %cst_23 {dimension_numbers = #tpu.dot_dimension_numbers<[2], [2], [1], [1], [0, 0, 0, 1, 1, 1], [0], [0]>} : vector<2x8x16xf32>, vector<2x8x16xf32>, vector<2x8x8xf32> -> vector<2x8x8xf32>
    "tpu.trace_stop"() : () -> ()
    %cst_24 = arith.constant dense<0xFF800000> : vector<2x8xf32>
    %40 = vector.multi_reduction <maximumf>, %39, %cst_24 [2] : vector<2x8x8xf32> to vector<2x8xf32>
    %41 = vector.shape_cast %40 : vector<2x8xf32> to vector<2x8x1xf32>
    %42 = vector.broadcast %41 : vector<2x8x1xf32> to vector<2x8x8xf32>
    %43 = arith.subf %39, %42 : vector<2x8x8xf32>
    %44 = math.exp %43 : vector<2x8x8xf32>
    %cst_25 = arith.constant dense<0.000000e+00> : vector<2x8xf32>
    %45 = vector.multi_reduction <add>, %44, %cst_25 [2] : vector<2x8x8xf32> to vector<2x8xf32>
    %46 = vector.shape_cast %45 : vector<2x8xf32> to vector<2x8x1xf32>
    %47 = tpu.reciprocal %46 {approx = true} : vector<2x8x1xf32> -> vector<2x8x1xf32>
    %48 = vector.broadcast %47 : vector<2x8x1xf32> to vector<2x8x8xf32>
    %49 = arith.mulf %44, %48 : vector<2x8x8xf32>
    "tpu.trace_start"() <{level = 10 : i32, message = "bln,bnk->blk"}> : () -> ()
    %cst_26 = arith.constant dense<0.000000e+00> : vector<2x8x16xf32>
    %50 = tpu.matmul %49, %38, %cst_26 {dimension_numbers = #tpu.dot_dimension_numbers<[2], [1], [1], [2], [0, 0, 0, 1, 1, 2], [0], [0]>} : vector<2x8x8xf32>, vector<2x8x16xf32>, vector<2x8x16xf32> -> vector<2x8x16xf32>
    "tpu.trace_stop"() : () -> ()
    %51 = vector.extract_strided_slice %12 {offsets = [0, 0, 32], sizes = [2, 8, 16], strides = [1, 1, 1]} : vector<2x8x128xf32> to vector<2x8x16xf32>
    %52 = vector.extract_strided_slice %16 {offsets = [0, 0, 32], sizes = [2, 8, 16], strides = [1, 1, 1]} : vector<2x8x128xf32> to vector<2x8x16xf32>
    %53 = vector.extract_strided_slice %20 {offsets = [0, 0, 32], sizes = [2, 8, 16], strides = [1, 1, 1]} : vector<2x8x128xf32> to vector<2x8x16xf32>
    "tpu.trace_start"() <{level = 10 : i32, message = "blk,bnk->bln"}> : () -> ()
    %cst_27 = arith.constant dense<0.000000e+00> : vector<2x8x8xf32>
    %54 = tpu.matmul %51, %52, %cst_27 {dimension_numbers = #tpu.dot_dimension_numbers<[2], [2], [1], [1], [0, 0, 0, 1, 1, 1], [0], [0]>} : vector<2x8x16xf32>, vector<2x8x16xf32>, vector<2x8x8xf32> -> vector<2x8x8xf32>
    "tpu.trace_stop"() : () -> ()
    %cst_28 = arith.constant dense<0xFF800000> : vector<2x8xf32>
    %55 = vector.multi_reduction <maximumf>, %54, %cst_28 [2] : vector<2x8x8xf32> to vector<2x8xf32>
    %56 = vector.shape_cast %55 : vector<2x8xf32> to vector<2x8x1xf32>
    %57 = vector.broadcast %56 : vector<2x8x1xf32> to vector<2x8x8xf32>
    %58 = arith.subf %54, %57 : vector<2x8x8xf32>
    %59 = math.exp %58 : vector<2x8x8xf32>
    %cst_29 = arith.constant dense<0.000000e+00> : vector<2x8xf32>
    %60 = vector.multi_reduction <add>, %59, %cst_29 [2] : vector<2x8x8xf32> to vector<2x8xf32>
    %61 = vector.shape_cast %60 : vector<2x8xf32> to vector<2x8x1xf32>
    %62 = tpu.reciprocal %61 {approx = true} : vector<2x8x1xf32> -> vector<2x8x1xf32>
    %63 = vector.broadcast %62 : vector<2x8x1xf32> to vector<2x8x8xf32>
    %64 = arith.mulf %59, %63 : vector<2x8x8xf32>
    "tpu.trace_start"() <{level = 10 : i32, message = "bln,bnk->blk"}> : () -> ()
    %cst_30 = arith.constant dense<0.000000e+00> : vector<2x8x16xf32>
    %65 = tpu.matmul %64, %53, %cst_30 {dimension_numbers = #tpu.dot_dimension_numbers<[2], [1], [1], [2], [0, 0, 0, 1, 1, 2], [0], [0]>} : vector<2x8x8xf32>, vector<2x8x16xf32>, vector<2x8x16xf32> -> vector<2x8x16xf32>
    "tpu.trace_stop"() : () -> ()
    %66 = vector.extract_strided_slice %12 {offsets = [0, 0, 48], sizes = [2, 8, 16], strides = [1, 1, 1]} : vector<2x8x128xf32> to vector<2x8x16xf32>
    %67 = vector.extract_strided_slice %16 {offsets = [0, 0, 48], sizes = [2, 8, 16], strides = [1, 1, 1]} : vector<2x8x128xf32> to vector<2x8x16xf32>
    %68 = vector.extract_strided_slice %20 {offsets = [0, 0, 48], sizes = [2, 8, 16], strides = [1, 1, 1]} : vector<2x8x128xf32> to vector<2x8x16xf32>
    "tpu.trace_start"() <{level = 10 : i32, message = "blk,bnk->bln"}> : () -> ()
    %cst_31 = arith.constant dense<0.000000e+00> : vector<2x8x8xf32>
    %69 = tpu.matmul %66, %67, %cst_31 {dimension_numbers = #tpu.dot_dimension_numbers<[2], [2], [1], [1], [0, 0, 0, 1, 1, 1], [0], [0]>} : vector<2x8x16xf32>, vector<2x8x16xf32>, vector<2x8x8xf32> -> vector<2x8x8xf32>
    "tpu.trace_stop"() : () -> ()
    %cst_32 = arith.constant dense<0xFF800000> : vector<2x8xf32>
    %70 = vector.multi_reduction <maximumf>, %69, %cst_32 [2] : vector<2x8x8xf32> to vector<2x8xf32>
    %71 = vector.shape_cast %70 : vector<2x8xf32> to vector<2x8x1xf32>
    %72 = vector.broadcast %71 : vector<2x8x1xf32> to vector<2x8x8xf32>
    %73 = arith.subf %69, %72 : vector<2x8x8xf32>
    %74 = math.exp %73 : vector<2x8x8xf32>
    %cst_33 = arith.constant dense<0.000000e+00> : vector<2x8xf32>
    %75 = vector.multi_reduction <add>, %74, %cst_33 [2] : vector<2x8x8xf32> to vector<2x8xf32>
    %76 = vector.shape_cast %75 : vector<2x8xf32> to vector<2x8x1xf32>
    %77 = tpu.reciprocal %76 {approx = true} : vector<2x8x1xf32> -> vector<2x8x1xf32>
    %78 = vector.broadcast %77 : vector<2x8x1xf32> to vector<2x8x8xf32>
    %79 = arith.mulf %74, %78 : vector<2x8x8xf32>
    "tpu.trace_start"() <{level = 10 : i32, message = "bln,bnk->blk"}> : () -> ()
    %cst_34 = arith.constant dense<0.000000e+00> : vector<2x8x16xf32>
    %80 = tpu.matmul %79, %68, %cst_34 {dimension_numbers = #tpu.dot_dimension_numbers<[2], [1], [1], [2], [0, 0, 0, 1, 1, 2], [0], [0]>} : vector<2x8x8xf32>, vector<2x8x16xf32>, vector<2x8x16xf32> -> vector<2x8x16xf32>
    "tpu.trace_stop"() : () -> ()
    %81 = vector.extract_strided_slice %12 {offsets = [0, 0, 64], sizes = [2, 8, 16], strides = [1, 1, 1]} : vector<2x8x128xf32> to vector<2x8x16xf32>
    %82 = vector.extract_strided_slice %16 {offsets = [0, 0, 64], sizes = [2, 8, 16], strides = [1, 1, 1]} : vector<2x8x128xf32> to vector<2x8x16xf32>
    %83 = vector.extract_strided_slice %20 {offsets = [0, 0, 64], sizes = [2, 8, 16], strides = [1, 1, 1]} : vector<2x8x128xf32> to vector<2x8x16xf32>
    "tpu.trace_start"() <{level = 10 : i32, message = "blk,bnk->bln"}> : () -> ()
    %cst_35 = arith.constant dense<0.000000e+00> : vector<2x8x8xf32>
    %84 = tpu.matmul %81, %82, %cst_35 {dimension_numbers = #tpu.dot_dimension_numbers<[2], [2], [1], [1], [0, 0, 0, 1, 1, 1], [0], [0]>} : vector<2x8x16xf32>, vector<2x8x16xf32>, vector<2x8x8xf32> -> vector<2x8x8xf32>
    "tpu.trace_stop"() : () -> ()
    %cst_36 = arith.constant dense<0xFF800000> : vector<2x8xf32>
    %85 = vector.multi_reduction <maximumf>, %84, %cst_36 [2] : vector<2x8x8xf32> to vector<2x8xf32>
    %86 = vector.shape_cast %85 : vector<2x8xf32> to vector<2x8x1xf32>
    %87 = vector.broadcast %86 : vector<2x8x1xf32> to vector<2x8x8xf32>
    %88 = arith.subf %84, %87 : vector<2x8x8xf32>
    %89 = math.exp %88 : vector<2x8x8xf32>
    %cst_37 = arith.constant dense<0.000000e+00> : vector<2x8xf32>
    %90 = vector.multi_reduction <add>, %89, %cst_37 [2] : vector<2x8x8xf32> to vector<2x8xf32>
    %91 = vector.shape_cast %90 : vector<2x8xf32> to vector<2x8x1xf32>
    %92 = tpu.reciprocal %91 {approx = true} : vector<2x8x1xf32> -> vector<2x8x1xf32>
    %93 = vector.broadcast %92 : vector<2x8x1xf32> to vector<2x8x8xf32>
    %94 = arith.mulf %89, %93 : vector<2x8x8xf32>
    "tpu.trace_start"() <{level = 10 : i32, message = "bln,bnk->blk"}> : () -> ()
    %cst_38 = arith.constant dense<0.000000e+00> : vector<2x8x16xf32>
    %95 = tpu.matmul %94, %83, %cst_38 {dimension_numbers = #tpu.dot_dimension_numbers<[2], [1], [1], [2], [0, 0, 0, 1, 1, 2], [0], [0]>} : vector<2x8x8xf32>, vector<2x8x16xf32>, vector<2x8x16xf32> -> vector<2x8x16xf32>
    "tpu.trace_stop"() : () -> ()
    %96 = vector.extract_strided_slice %12 {offsets = [0, 0, 80], sizes = [2, 8, 16], strides = [1, 1, 1]} : vector<2x8x128xf32> to vector<2x8x16xf32>
    %97 = vector.extract_strided_slice %16 {offsets = [0, 0, 80], sizes = [2, 8, 16], strides = [1, 1, 1]} : vector<2x8x128xf32> to vector<2x8x16xf32>
    %98 = vector.extract_strided_slice %20 {offsets = [0, 0, 80], sizes = [2, 8, 16], strides = [1, 1, 1]} : vector<2x8x128xf32> to vector<2x8x16xf32>
    "tpu.trace_start"() <{level = 10 : i32, message = "blk,bnk->bln"}> : () -> ()
    %cst_39 = arith.constant dense<0.000000e+00> : vector<2x8x8xf32>
    %99 = tpu.matmul %96, %97, %cst_39 {dimension_numbers = #tpu.dot_dimension_numbers<[2], [2], [1], [1], [0, 0, 0, 1, 1, 1], [0], [0]>} : vector<2x8x16xf32>, vector<2x8x16xf32>, vector<2x8x8xf32> -> vector<2x8x8xf32>
    "tpu.trace_stop"() : () -> ()
    %cst_40 = arith.constant dense<0xFF800000> : vector<2x8xf32>
    %100 = vector.multi_reduction <maximumf>, %99, %cst_40 [2] : vector<2x8x8xf32> to vector<2x8xf32>
    %101 = vector.shape_cast %100 : vector<2x8xf32> to vector<2x8x1xf32>
    %102 = vector.broadcast %101 : vector<2x8x1xf32> to vector<2x8x8xf32>
    %103 = arith.subf %99, %102 : vector<2x8x8xf32>
    %104 = math.exp %103 : vector<2x8x8xf32>
    %cst_41 = arith.constant dense<0.000000e+00> : vector<2x8xf32>
    %105 = vector.multi_reduction <add>, %104, %cst_41 [2] : vector<2x8x8xf32> to vector<2x8xf32>
    %106 = vector.shape_cast %105 : vector<2x8xf32> to vector<2x8x1xf32>
    %107 = tpu.reciprocal %106 {approx = true} : vector<2x8x1xf32> -> vector<2x8x1xf32>
    %108 = vector.broadcast %107 : vector<2x8x1xf32> to vector<2x8x8xf32>
    %109 = arith.mulf %104, %108 : vector<2x8x8xf32>
    "tpu.trace_start"() <{level = 10 : i32, message = "bln,bnk->blk"}> : () -> ()
    %cst_42 = arith.constant dense<0.000000e+00> : vector<2x8x16xf32>
    %110 = tpu.matmul %109, %98, %cst_42 {dimension_numbers = #tpu.dot_dimension_numbers<[2], [1], [1], [2], [0, 0, 0, 1, 1, 2], [0], [0]>} : vector<2x8x8xf32>, vector<2x8x16xf32>, vector<2x8x16xf32> -> vector<2x8x16xf32>
    "tpu.trace_stop"() : () -> ()
    %111 = vector.extract_strided_slice %12 {offsets = [0, 0, 96], sizes = [2, 8, 16], strides = [1, 1, 1]} : vector<2x8x128xf32> to vector<2x8x16xf32>
    %112 = vector.extract_strided_slice %16 {offsets = [0, 0, 96], sizes = [2, 8, 16], strides = [1, 1, 1]} : vector<2x8x128xf32> to vector<2x8x16xf32>
    %113 = vector.extract_strided_slice %20 {offsets = [0, 0, 96], sizes = [2, 8, 16], strides = [1, 1, 1]} : vector<2x8x128xf32> to vector<2x8x16xf32>
    "tpu.trace_start"() <{level = 10 : i32, message = "blk,bnk->bln"}> : () -> ()
    %cst_43 = arith.constant dense<0.000000e+00> : vector<2x8x8xf32>
    %114 = tpu.matmul %111, %112, %cst_43 {dimension_numbers = #tpu.dot_dimension_numbers<[2], [2], [1], [1], [0, 0, 0, 1, 1, 1], [0], [0]>} : vector<2x8x16xf32>, vector<2x8x16xf32>, vector<2x8x8xf32> -> vector<2x8x8xf32>
    "tpu.trace_stop"() : () -> ()
    %cst_44 = arith.constant dense<0xFF800000> : vector<2x8xf32>
    %115 = vector.multi_reduction <maximumf>, %114, %cst_44 [2] : vector<2x8x8xf32> to vector<2x8xf32>
    %116 = vector.shape_cast %115 : vector<2x8xf32> to vector<2x8x1xf32>
    %117 = vector.broadcast %116 : vector<2x8x1xf32> to vector<2x8x8xf32>
    %118 = arith.subf %114, %117 : vector<2x8x8xf32>
    %119 = math.exp %118 : vector<2x8x8xf32>
    %cst_45 = arith.constant dense<0.000000e+00> : vector<2x8xf32>
    %120 = vector.multi_reduction <add>, %119, %cst_45 [2] : vector<2x8x8xf32> to vector<2x8xf32>
    %121 = vector.shape_cast %120 : vector<2x8xf32> to vector<2x8x1xf32>
    %122 = tpu.reciprocal %121 {approx = true} : vector<2x8x1xf32> -> vector<2x8x1xf32>
    %123 = vector.broadcast %122 : vector<2x8x1xf32> to vector<2x8x8xf32>
    %124 = arith.mulf %119, %123 : vector<2x8x8xf32>
    "tpu.trace_start"() <{level = 10 : i32, message = "bln,bnk->blk"}> : () -> ()
    %cst_46 = arith.constant dense<0.000000e+00> : vector<2x8x16xf32>
    %125 = tpu.matmul %124, %113, %cst_46 {dimension_numbers = #tpu.dot_dimension_numbers<[2], [1], [1], [2], [0, 0, 0, 1, 1, 2], [0], [0]>} : vector<2x8x8xf32>, vector<2x8x16xf32>, vector<2x8x16xf32> -> vector<2x8x16xf32>
    "tpu.trace_stop"() : () -> ()
    %126 = vector.extract_strided_slice %12 {offsets = [0, 0, 112], sizes = [2, 8, 16], strides = [1, 1, 1]} : vector<2x8x128xf32> to vector<2x8x16xf32>
    %127 = vector.extract_strided_slice %16 {offsets = [0, 0, 112], sizes = [2, 8, 16], strides = [1, 1, 1]} : vector<2x8x128xf32> to vector<2x8x16xf32>
    %128 = vector.extract_strided_slice %20 {offsets = [0, 0, 112], sizes = [2, 8, 16], strides = [1, 1, 1]} : vector<2x8x128xf32> to vector<2x8x16xf32>
    "tpu.trace_start"() <{level = 10 : i32, message = "blk,bnk->bln"}> : () -> ()
    %cst_47 = arith.constant dense<0.000000e+00> : vector<2x8x8xf32>
    %129 = tpu.matmul %126, %127, %cst_47 {dimension_numbers = #tpu.dot_dimension_numbers<[2], [2], [1], [1], [0, 0, 0, 1, 1, 1], [0], [0]>} : vector<2x8x16xf32>, vector<2x8x16xf32>, vector<2x8x8xf32> -> vector<2x8x8xf32>
    "tpu.trace_stop"() : () -> ()
    %cst_48 = arith.constant dense<0xFF800000> : vector<2x8xf32>
    %130 = vector.multi_reduction <maximumf>, %129, %cst_48 [2] : vector<2x8x8xf32> to vector<2x8xf32>
    %131 = vector.shape_cast %130 : vector<2x8xf32> to vector<2x8x1xf32>
    %132 = vector.broadcast %131 : vector<2x8x1xf32> to vector<2x8x8xf32>
    %133 = arith.subf %129, %132 : vector<2x8x8xf32>
    %134 = math.exp %133 : vector<2x8x8xf32>
    %cst_49 = arith.constant dense<0.000000e+00> : vector<2x8xf32>
    %135 = vector.multi_reduction <add>, %134, %cst_49 [2] : vector<2x8x8xf32> to vector<2x8xf32>
    %136 = vector.shape_cast %135 : vector<2x8xf32> to vector<2x8x1xf32>
    %137 = tpu.reciprocal %136 {approx = true} : vector<2x8x1xf32> -> vector<2x8x1xf32>
    %138 = vector.broadcast %137 : vector<2x8x1xf32> to vector<2x8x8xf32>
    %139 = arith.mulf %134, %138 : vector<2x8x8xf32>
    "tpu.trace_start"() <{level = 10 : i32, message = "bln,bnk->blk"}> : () -> ()
    %cst_50 = arith.constant dense<0.000000e+00> : vector<2x8x16xf32>
    %140 = tpu.matmul %139, %128, %cst_50 {dimension_numbers = #tpu.dot_dimension_numbers<[2], [1], [1], [2], [0, 0, 0, 1, 1, 2], [0], [0]>} : vector<2x8x8xf32>, vector<2x8x16xf32>, vector<2x8x16xf32> -> vector<2x8x16xf32>
    "tpu.trace_stop"() : () -> ()
    %141 = tpu.concatenate %35, %50, %65, %80, %95, %110, %125, %140 in 2 : vector<2x8x16xf32>, vector<2x8x16xf32>, vector<2x8x16xf32>, vector<2x8x16xf32>, vector<2x8x16xf32>, vector<2x8x16xf32>, vector<2x8x16xf32>, vector<2x8x16xf32> -> vector<2x8x128xf32>
    %142 = vector.shape_cast %141 : vector<2x8x128xf32> to vector<16x128xf32>
    %143 = arith.truncf %142 : vector<16x128xf32> to vector<16x128xbf16>
    %c0_51 = arith.constant 0 : index
    %c0_52 = arith.constant 0 : index
    %c0_53 = arith.constant 0 : index
    %144 = vector.load %arg7[%c0_51, %c0_52, %c0_53] : memref<1x128x128xbf16, #tpu.memory_space<vmem>>, vector<1x128x128xbf16>
    %145 = vector.shape_cast %144 : vector<1x128x128xbf16> to vector<128x128xbf16>
    %cst_54 = arith.constant dense<0.000000e+00> : vector<16x128xf32>
    %146 = tpu.matmul %143, %145, %cst_54 {dimension_numbers = #tpu.dot_dimension_numbers<[1], [0], [0], [1], [0, 0, 1, 1], [], []>} : vector<16x128xbf16>, vector<128x128xbf16>, vector<16x128xf32> -> vector<16x128xf32>
    %147 = arith.addf %7, %146 : vector<16x128xf32>
    %148 = vector.shape_cast %147 : vector<16x128xf32> to vector<2x8x128xf32>
    %cst_55 = arith.constant dense<0.000000e+00> : vector<8xf32>
    %149 = vector.multi_reduction <add>, %148, %cst_55 [0, 2] : vector<2x8x128xf32> to vector<8xf32>
    %150 = vector.shape_cast %149 : vector<8xf32> to vector<1x8x1xf32>
    %cst_56 = arith.constant 2.560000e+02 : f32
    %151 = vector.broadcast %cst_56 : f32 to vector<1x8x1xf32>
    %152 = arith.divf %150, %151 : vector<1x8x1xf32>
    %153 = vector.broadcast %152 : vector<1x8x1xf32> to vector<2x8x128xf32>
    %154 = arith.subf %148, %153 : vector<2x8x128xf32>
    %155 = arith.mulf %154, %154 : vector<2x8x128xf32>
    %cst_57 = arith.constant dense<0.000000e+00> : vector<8xf32>
    %156 = vector.multi_reduction <add>, %155, %cst_57 [0, 2] : vector<2x8x128xf32> to vector<8xf32>
    %157 = vector.shape_cast %156 : vector<8xf32> to vector<1x8x1xf32>
    %cst_58 = arith.constant 2.560000e+02 : f32
    %158 = vector.broadcast %cst_58 : f32 to vector<1x8x1xf32>
    %159 = arith.divf %157, %158 : vector<1x8x1xf32>
    %160 = vector.shape_cast %4 : vector<1x128xf32> to vector<1x1x128xf32>
    %cst_59 = arith.constant 9.99999974E-6 : f32
    %161 = vector.broadcast %cst_59 : f32 to vector<1x8x1xf32>
    %162 = arith.addf %159, %161 : vector<1x8x1xf32>
    %163 = math.rsqrt %162 : vector<1x8x1xf32>
    %164 = vector.broadcast %160 : vector<1x1x128xf32> to vector<1x8x128xf32>
    %165 = vector.broadcast %163 : vector<1x8x1xf32> to vector<1x8x128xf32>
    %166 = arith.mulf %164, %165 : vector<1x8x128xf32>
    %167 = vector.broadcast %166 : vector<1x8x128xf32> to vector<2x8x128xf32>
    %168 = arith.mulf %154, %167 : vector<2x8x128xf32>
    %169 = vector.shape_cast %6 : vector<1x128xf32> to vector<1x1x128xf32>
    %170 = vector.broadcast %169 : vector<1x1x128xf32> to vector<2x8x128xf32>
    %171 = arith.addf %168, %170 : vector<2x8x128xf32>
    %172 = vector.shape_cast %171 : vector<2x8x128xf32> to vector<16x128xf32>
    %173 = arith.truncf %172 : vector<16x128xf32> to vector<16x128xbf16>
    %c0_60 = arith.constant 0 : index
    %c0_61 = arith.constant 0 : index
    %c0_62 = arith.constant 0 : index
    %174 = vector.load %arg10[%c0_60, %c0_61, %c0_62] : memref<1x128x512xbf16, #tpu.memory_space<vmem>>, vector<1x128x512xbf16>
    %175 = vector.shape_cast %174 : vector<1x128x512xbf16> to vector<128x512xbf16>
    %cst_63 = arith.constant dense<0.000000e+00> : vector<16x512xf32>
    %176 = tpu.matmul %173, %175, %cst_63 {dimension_numbers = #tpu.dot_dimension_numbers<[1], [0], [0], [1], [0, 0, 1, 1], [], []>} : vector<16x128xbf16>, vector<128x512xbf16>, vector<16x512xf32> -> vector<16x512xf32>
    %c0_64 = arith.constant 0 : index
    %c0_65 = arith.constant 0 : index
    %c0_66 = arith.constant 0 : index
    %177 = vector.load %arg11[%c0_64, %c0_65, %c0_66] : memref<1x1x512xf32, #tpu.memory_space<vmem>>, vector<1x1x512xf32>
    %178 = vector.shape_cast %177 : vector<1x1x512xf32> to vector<1x512xf32>
    %179 = vector.broadcast %178 : vector<1x512xf32> to vector<16x512xf32>
    %180 = arith.addf %176, %179 : vector<16x512xf32>
    %cst_67 = arith.constant 0.000000e+00 : f32
    %181 = vector.broadcast %cst_67 : f32 to vector<16x512xf32>
    %182 = arith.maximumf %180, %181 : vector<16x512xf32>
    %183 = arith.truncf %182 : vector<16x512xf32> to vector<16x512xbf16>
    %c0_68 = arith.constant 0 : index
    %c0_69 = arith.constant 0 : index
    %c0_70 = arith.constant 0 : index
    %184 = vector.load %arg12[%c0_68, %c0_69, %c0_70] : memref<1x512x128xbf16, #tpu.memory_space<vmem>>, vector<1x512x128xbf16>
    %185 = vector.shape_cast %184 : vector<1x512x128xbf16> to vector<512x128xbf16>
    %cst_71 = arith.constant dense<0.000000e+00> : vector<16x128xf32>
    %186 = tpu.matmul %183, %185, %cst_71 {dimension_numbers = #tpu.dot_dimension_numbers<[1], [0], [0], [1], [0, 0, 1, 1], [], []>} : vector<16x512xbf16>, vector<512x128xbf16>, vector<16x128xf32> -> vector<16x128xf32>
    %c0_72 = arith.constant 0 : index
    %c0_73 = arith.constant 0 : index
    %c0_74 = arith.constant 0 : index
    %187 = vector.load %arg13[%c0_72, %c0_73, %c0_74] : memref<1x1x128xf32, #tpu.memory_space<vmem>>, vector<1x1x128xf32>
    %188 = vector.shape_cast %187 : vector<1x1x128xf32> to vector<1x128xf32>
    %189 = vector.broadcast %188 : vector<1x128xf32> to vector<16x128xf32>
    %190 = arith.addf %186, %189 : vector<16x128xf32>
    %191 = arith.addf %172, %190 : vector<16x128xf32>
    %192 = vector.shape_cast %191 : vector<16x128xf32> to vector<2x8x128xf32>
    %cst_75 = arith.constant dense<0.000000e+00> : vector<8xf32>
    %193 = vector.multi_reduction <add>, %192, %cst_75 [0, 2] : vector<2x8x128xf32> to vector<8xf32>
    %194 = vector.shape_cast %193 : vector<8xf32> to vector<1x8x1xf32>
    %cst_76 = arith.constant 2.560000e+02 : f32
    %195 = vector.broadcast %cst_76 : f32 to vector<1x8x1xf32>
    %196 = arith.divf %194, %195 : vector<1x8x1xf32>
    %197 = vector.broadcast %196 : vector<1x8x1xf32> to vector<2x8x128xf32>
    %198 = arith.subf %192, %197 : vector<2x8x128xf32>
    %199 = arith.mulf %198, %198 : vector<2x8x128xf32>
    %cst_77 = arith.constant dense<0.000000e+00> : vector<8xf32>
    %200 = vector.multi_reduction <add>, %199, %cst_77 [0, 2] : vector<2x8x128xf32> to vector<8xf32>
    %201 = vector.shape_cast %200 : vector<8xf32> to vector<1x8x1xf32>
    %cst_78 = arith.constant 2.560000e+02 : f32
    %202 = vector.broadcast %cst_78 : f32 to vector<1x8x1xf32>
    %203 = arith.divf %201, %202 : vector<1x8x1xf32>
    %204 = vector.shape_cast %4 : vector<1x128xf32> to vector<1x1x128xf32>
    %cst_79 = arith.constant 9.99999974E-6 : f32
    %205 = vector.broadcast %cst_79 : f32 to vector<1x8x1xf32>
    %206 = arith.addf %203, %205 : vector<1x8x1xf32>
    %207 = math.rsqrt %206 : vector<1x8x1xf32>
    %208 = vector.broadcast %204 : vector<1x1x128xf32> to vector<1x8x128xf32>
    %209 = vector.broadcast %207 : vector<1x8x1xf32> to vector<1x8x128xf32>
    %210 = arith.mulf %208, %209 : vector<1x8x128xf32>
    %211 = vector.broadcast %210 : vector<1x8x128xf32> to vector<2x8x128xf32>
    %212 = arith.mulf %198, %211 : vector<2x8x128xf32>
    %213 = vector.shape_cast %6 : vector<1x128xf32> to vector<1x1x128xf32>
    %214 = vector.broadcast %213 : vector<1x1x128xf32> to vector<2x8x128xf32>
    %215 = arith.addf %212, %214 : vector<2x8x128xf32>
    %216 = vector.shape_cast %215 : vector<2x8x128xf32> to vector<16x128xf32>
    %c0_80 = arith.constant 0 : index
    %c0_81 = arith.constant 0 : index
    %217 = vector.load %arg15[%c0_80, %c0_81] : memref<16x128xf32, #tpu.memory_space<vmem>>, vector<16x128xf32>
    tpu.vector_store %arg15[%c0_80, %c0_81], %216 {strides = array<i32>} : memref<16x128xf32, #tpu.memory_space<vmem>>, vector<16x128xf32>,
    %c2_i32 = arith.constant 2 : i32
    %218 = arith.cmpi eq, %arg0, %c2_i32 : i32
    %219 = arith.extui %218 : i1 to i32
    %c0_i32_82 = arith.constant 0 : i32
    %220 = arith.cmpi ne, %219, %c0_i32_82 : i32
    scf.if %220 {
      %221 = vector.shape_cast %216 : vector<16x128xf32> to vector<2x8x128xf32>
      %c0_83 = arith.constant 0 : index
      %c0_84 = arith.constant 0 : index
      %c0_85 = arith.constant 0 : index
      %222 = vector.load %arg14[%c0_83, %c0_84, %c0_85] : memref<2x8x128xf32, #tpu.memory_space<vmem>>, vector<2x8x128xf32>
      tpu.vector_store %arg14[%c0_83, %c0_84, %c0_85], %221 {strides = array<i32>} : memref<2x8x128xf32, #tpu.memory_space<vmem>>, vector<2x8x128xf32>,
    } else {
    }
    return
  }
  func.func @transform_0(%arg0: i32) -> (i32, i32, i32) {
    %c0_i32 = arith.constant 0 : i32
    %c0_i32_0 = arith.constant 0 : i32
    %c0_i32_1 = arith.constant 0 : i32
    %c0_i32_2 = arith.constant 0 : i32
    return %c0_i32, %c0_i32_0, %c0_i32_1 : i32, i32, i32
  }
  func.func @transform_1(%arg0: i32) -> (i32, i32) {
    %c0_i32 = arith.constant 0 : i32
    %c0_i32_0 = arith.constant 0 : i32
    %c0_i32_1 = arith.constant 0 : i32
    return %c0_i32, %c0_i32_0 : i32, i32
  }
  func.func @transform_2(%arg0: i32) -> (i32, i32) {
    %c0_i32 = arith.constant 0 : i32
    %c0_i32_0 = arith.constant 0 : i32
    %c0_i32_1 = arith.constant 0 : i32
    return %c0_i32, %c0_i32_0 : i32, i32
  }
  func.func @transform_3(%arg0: i32) -> (i32, i32, i32) {
    %c0_i32 = arith.constant 0 : i32
    %c0_i32_0 = arith.constant 0 : i32
    %c0_i32_1 = arith.constant 0 : i32
    return %arg0, %c0_i32, %c0_i32_0 : i32, i32, i32
  }
  func.func @transform_4(%arg0: i32) -> (i32, i32, i32) {
    %c0_i32 = arith.constant 0 : i32
    %c0_i32_0 = arith.constant 0 : i32
    %c0_i32_1 = arith.constant 0 : i32
    return %arg0, %c0_i32, %c0_i32_0 : i32, i32, i32
  }
  func.func @transform_5(%arg0: i32) -> (i32, i32, i32) {
    %c0_i32 = arith.constant 0 : i32
    %c0_i32_0 = arith.constant 0 : i32
    %c0_i32_1 = arith.constant 0 : i32
    return %arg0, %c0_i32, %c0_i32_0 : i32, i32, i32
  }
  func.func @transform_6(%arg0: i32) -> (i32, i32, i32) {
    %c0_i32 = arith.constant 0 : i32
    %c0_i32_0 = arith.constant 0 : i32
    %c0_i32_1 = arith.constant 0 : i32
    return %arg0, %c0_i32, %c0_i32_0 : i32, i32, i32
  }
  func.func @transform_7(%arg0: i32) -> (i32, i32, i32) {
    %c0_i32 = arith.constant 0 : i32
    %c0_i32_0 = arith.constant 0 : i32
    %c0_i32_1 = arith.constant 0 : i32
    return %arg0, %c0_i32, %c0_i32_0 : i32, i32, i32
  }
  func.func @transform_8(%arg0: i32) -> (i32, i32, i32) {
    %c0_i32 = arith.constant 0 : i32
    %c0_i32_0 = arith.constant 0 : i32
    %c0_i32_1 = arith.constant 0 : i32
    return %arg0, %c0_i32, %c0_i32_0 : i32, i32, i32
  }
  func.func @transform_9(%arg0: i32) -> (i32, i32, i32) {
    %c0_i32 = arith.constant 0 : i32
    %c0_i32_0 = arith.constant 0 : i32
    %c0_i32_1 = arith.constant 0 : i32
    return %arg0, %c0_i32, %c0_i32_0 : i32, i32, i32
  }
  func.func @transform_10(%arg0: i32) -> (i32, i32, i32) {
    %c0_i32 = arith.constant 0 : i32
    %c0_i32_0 = arith.constant 0 : i32
    %c0_i32_1 = arith.constant 0 : i32
    return %arg0, %c0_i32, %c0_i32_0 : i32, i32, i32
  }
  func.func @transform_11(%arg0: i32) -> (i32, i32, i32) {
    %c0_i32 = arith.constant 0 : i32
    %c0_i32_0 = arith.constant 0 : i32
    %c0_i32_1 = arith.constant 0 : i32
    return %arg0, %c0_i32, %c0_i32_0 : i32, i32, i32
  }
  func.func @transform_12(%arg0: i32) -> (i32, i32, i32) {
    %c0_i32 = arith.constant 0 : i32
    %c0_i32_0 = arith.constant 0 : i32
    %c0_i32_1 = arith.constant 0 : i32
    return %arg0, %c0_i32, %c0_i32_0 : i32, i32, i32
  }
  func.func @transform_13(%arg0: i32) -> (i32, i32, i32) {
    %c0_i32 = arith.constant 0 : i32
    %c0_i32_0 = arith.constant 0 : i32
    %c0_i32_1 = arith.constant 0 : i32
    %c0_i32_2 = arith.constant 0 : i32
    return %c0_i32, %c0_i32_0, %c0_i32_1 : i32, i32, i32
  }
}

</mosaic_0001>

<bundles_post_ra>
// kernel: tpu_custom_call.1
= control target key start
LH: loop header
LB: loop body
LE: loop exit
PB: predicated region body
PF: predicated region fallthrough
CT: control target
= control target key end

     0   :  { %s6957_s0 = inlined_call_operand.vmem [shape: f32[2,8,2], index: 0, kind: input, shape index: {}]   ;;  %s6958_s1 = inlined_call_operand.vmem [shape: f32[2,128], index: 1, kind: input, shape index: {}]   ;;  %s6959_s2 = inlined_call_operand.vmem [shape: f32[1,128], index: 2, kind: input, shape index: {}]   ;;  %s6960_s3 = inlined_call_operand.hbm [shape: bf16[3,128,128], index: 3, kind: input, shape index: {}]   ;;  %s6961_s4 = inlined_call_operand.hbm [shape: bf16[3,128,128], index: 4, kind: input, shape index: {}]   ;;  %s6962_s5 = inlined_call_operand.hbm [shape: bf16[3,128,128], index: 5, kind: input, shape index: {}]   ;;  %s6963_s6 = inlined_call_operand.hbm [shape: bf16[3,128,128], index: 6, kind: input, shape index: {}]   ;;  %s6964_s7 = inlined_call_operand.vmem [shape: f32[3,1,128], index: 7, kind: input, shape index: {}]   ;;  %s6965_s8 = inlined_call_operand.vmem [shape: f32[3,1,128], index: 8, kind: input, shape index: {}]   ;;  %s6966_s9 = inlined_call_operand.hbm [shape: bf16[3,128,512], index: 9, kind: input, shape index: {}]   ;;  %s6967_s10 = inlined_call_operand.vmem [shape: f32[3,1,512], index: 10, kind: input, shape index: {}]   ;;  %s6968_s11 = inlined_call_operand.hbm [shape: bf16[3,512,128], index: 11, kind: input, shape index: {}]   ;;  %s6969_s12 = inlined_call_operand.vmem [shape: f32[3,1,128], index: 12, kind: input, shape index: {}]   ;;  %s6970_s13 = inlined_call_operand.hbm [shape: f32[2,8,128], index: 13, kind: output, shape index: {}]  }
   0x1   :  { %6983 = sst [smem:[#allocation23_spill]] %s6957_s0 }
   0x2   :  { %6984 = sst [smem:[#allocation24_spill]] %s6958_s1 }
   0x3   :  { %6985 = sst [smem:[#allocation25_spill]] %s6959_s2 }
   0x4   :  { %6986 = sst [smem:[#allocation26_spill]] %s6961_s4 }
   0x5   :  { %6987 = sst [smem:[#allocation27_spill]] %s6963_s6 }
   0x6   :  { %6988 = sst [smem:[#allocation28_spill]] %s6967_s10 }
   0x7   :  { %6989 = sst [smem:[#allocation29_spill]] %s6970_s13 }
   0x8   :  { %18 = vsyncpa [#allocation4], 0 }
   0x9   :  { %20 = vsyncpa [#allocation4 + $0x1], 0 }
   0xa   :  { %21 = vsyncpa [#allocation7], 0 }
   0xb   :  { %23 = vsyncpa [#allocation7 + $0x1], 0 }
   0xc   :  { %24 = vsyncpa [#allocation10], 0 }
   0xd   :  { %26 = vsyncpa [#allocation10 + $0x1], 0 }
   0xe   :  { %27 = vsyncpa [#allocation13], 0 }
   0xf   :  { %29 = vsyncpa [#allocation13 + $0x1], 0 }
  0x10   :  { %30 = vsyncpa [#allocation5], 0  ;;  %s6053_s25 = smov 0   ;;  %s6055_s26 = smov 0  }
  0x11   :  { %s6057_s27 = smov 0   ;;  %s6059_s28 = smov 0  }
  0x12 LB: > { %6990 = sst [smem:[#allocation20_spill]] %s5952_s27  ;;  %s6072_s29 = sadd.s32 4294967295, %s5956_s28   ;;  %s5956_s28 = sphi %s6059_s28, %s7013_s28   ;;  %s5952_s27 = sphi %s6057_s27, %s7015_s27   ;;  %s5948_s26 = sphi %s6055_s26, %s7017_s26   ;;  %s5944_s25 = sphi %s6053_s25, %s7016_s25  }
  0x13   : > { %s6075_s30 = sadd.s32 1, %s5956_s28   ;;  %s106_s15 = sadd.s32 1, %s5952_s27 }
  0x14   : > { %6991 = sst [smem:[#allocation21_spill]] %s6075_s30  ;;  %s103_s14 = ssub.s32 %s5956_s28, %s6075_s30 }
  0x15   : > { %p104_p0 = scmp.eq.s32.totalorder %s103_s14, 0  ;;  %p113_p1 = scmp.ne.s32.totalorder %s5952_s27, %s5948_s26 }
  0x16   : > { %p114_p2 = scmp.eq.s32.totalorder %s5956_s28, 0  ;;  %p119_p3 = scmp.ne.s32.totalorder %s5948_s26, %s5944_s25 }
  0x17   : > { %s6085_s16 = scalar_select %p104_p0, %s5952_s27, %s106_s15  }
  0x18   : > { %p115_p4 = por %p114_p2, %p113_p1  ;;  %p120_p5 = scmp.eq.s32.totalorder %s6072_s29, 0 }
  0x19   : > { %6992 = sst [smem:[#allocation22_spill]] %s6085_s16  ;;  %p5426_p6 = scmp.lt.s32.totalorder %s5956_s28, 3 }
  0x1a   : > { %p6089_p7 = por %p120_p5, %p119_p3  ;;  %s6094_s18 = sand.u32 1, %s5952_s27  }
  0x1b   : > { %s6097_s19 = sshll.u32 %s6094_s18, 6  ;;  %s6100_s20 = sshll.u32 %s5956_s28, 10 }
  0x1c   : > { %s6993_s17 = scalar_select %p6089_p7, 1, 0 }
  0x1d   : > { %p6102_p8 = pnand %p5426_p6, %p115_p4  ;;  %s6975_s22 = sand.u32 1, %s5956_s28  }
  0x1e   : > { %s6995_s4 = sld [smem:[#allocation26_spill]]  ;;  %s432_s14 = scalar_lea.vmem [#allocation6], %s6097_s19 }
  0x1f   : > { %s439_s15 = sshll.u32 %s432_s14, 4  ;;  %s6120_s16 = scalar_lea.sflag [#allocation7], %s6975_s22  ;;  %s6115_s15 = int_to_ptr.vmem [resolvable:$true] %s439_s15 }
  0x20   : > { %p6126_p12 = pneg %p6102_p8 }
  0x24   : > { %s6111_s25 = scalar_lea.hbm %s6995_s4, %s6100_s20  ;;  %s5705_s30 = scalar_lea.hbm %s6995_s4, 3072 }
  0x25   : > { %s5700_s27 = scalar_lea.hbm %s6111_s25, 1024  ;;  %p5706_p1 = scmp.lt.u32.totalorder %s6111_s25, %s6995_s4 }
  0x26   : > { %p5701_p11 = scmp.ne.s32.totalorder %s6111_s25, %s5700_s27  ;;  %p5707_p2 = scmp.lt.u32.totalorder %s5705_s30, %s5700_s27 }
  0x27   : > { %p5709_p4 = scmp.lt.u32.totalorder %s5700_s27, %s6111_s25 }
  0x28   : > { %p5703_p13 = pnand %p6126_p12, %p5701_p11  ;;  %p5708_p3 = por %p5707_p2, %p5706_p1 }
  0x2a   : > { %p5704_p0 = pneg %p5703_p13  ;;  %p5710_p5 = por %p5709_p4, %p5708_p3 }
  0x2c   : > { %p5711_p6 = pnand %p5710_p5, %p5704_p0 }
  0x2e   : > { %5714 = shalt.err (!%p5711_p6)
}
  0x2f   : > { %s5715_s22 = scalar_lea.vmem %s6115_s15, 1024  ;;  %s5958_s24 = smov [#allocation6]  }
  0x30   : > { %p5716_p11 = scmp.ne.s32.totalorder %s6115_s15, %s5715_s22  ;;  %s5720_s14 = sshll.u32 %s5958_s24, 4  ;;  %s5721_s14 = int_to_ptr.vmem [resolvable:$false] %s5720_s14 }
  0x31   : > { %s5722_s2 = scalar_lea.vmem %s5721_s14, 2048  ;;  %p5723_p10 = scmp.lt.s32.totalorder %s6115_s15, %s5721_s14 }
  0x32   : > { %p5718_p13 = pnand %p5716_p11, %p6126_p12  ;;  %p5724_p7 = scmp.lt.s32.totalorder %s5722_s2, %s5715_s22 }
  0x34   : > { %p5719_p9 = pneg %p5718_p13  ;;  %p5725_p1 = por %p5724_p7, %p5723_p10 }
  0x36   : > { %p5726_p2 = pnand %p5725_p1, %p5719_p9 }
  0x38   : > { %5729 = shalt.err (!%p5726_p2)
}
  0x39   : > { %s6977_s13 = smov 64   ;;  %s6979_s27 = smov 4  }
  0x3a   : > { %5413 = dma.hbm_to_vmem [thread:$0]  (!%p6102_p8), %s6111_s25, 1024, %s6115_s15, %s6120_s16, %s6977_s13, %s6977_s13, %s6979_s27  }
  0x3b   : > { %p6997_p7 = scmp.lt.s32.totalorder %s5956_s28, 4  ;;  %p6998_p9 = scmp.ge.s32.totalorder %s5956_s28, 1 }
  0x3c   : > { %s7000_s6 = sld [smem:[#allocation27_spill]]  ;;  %s474_s2 = scalar_lea.vmem [#allocation9], %s6097_s19 }
  0x3d   : > { %p6157_p10 = pnand %p6998_p9, %p6997_p7  ;;  %s481_s4 = sshll.u32 %s474_s2, 4  ;;  %s6168_s4 = int_to_ptr.vmem [resolvable:$true] %s481_s4 }
  0x3e   : > { %s7001_s25 = sand.u32 1, %s5956_s28  }
  0x3f   : > { %s6999_s30 = scalar_select %p6157_p10, 1, 0 }
  0x40   : > { %s6172_s15 = scalar_lea.sflag [#allocation10], %s7001_s25 }
  0x42   : > { %s6165_s14 = scalar_lea.hbm %s7000_s6, %s6100_s20  ;;  %s5735_s24 = scalar_lea.hbm %s7000_s6, 3072 }
  0x43   : > { %s5730_s13 = scalar_lea.hbm %s6165_s14, 1024  ;;  %p5736_p5 = scmp.lt.u32.totalorder %s6165_s14, %s7000_s6 }
  0x44   : > { %p5731_p0 = scmp.ne.s32.totalorder %s6165_s14, %s5730_s13  ;;  %p5737_p6 = scmp.lt.u32.totalorder %s5735_s24, %s5730_s13 }
  0x45   : > { %p5739_p13 = scmp.lt.u32.totalorder %s5730_s13, %s6165_s14 }
  0x46   : > { %p5733_p3 = pnand %p5731_p0, %p6126_p12  ;;  %p5738_p11 = por %p5737_p6, %p5736_p5 }
  0x48   : > { %p5734_p4 = pneg %p5733_p3  ;;  %p5740_p1 = por %p5739_p13, %p5738_p11 }
  0x4a   : > { %p5741_p2 = pnand %p5740_p1, %p5734_p4 }
  0x4c   : > { %5744 = shalt.err (!%p5741_p2)
}
  0x4d   : > { %s5745_s2 = scalar_lea.vmem %s6168_s4, 1024  ;;  %s5961_s27 = smov [#allocation9]  }
  0x4e   : > { %p5746_p7 = scmp.ne.s32.totalorder %s6168_s4, %s5745_s2  ;;  %s5750_s25 = sshll.u32 %s5961_s27, 4  ;;  %s5751_s25 = int_to_ptr.vmem [resolvable:$false] %s5750_s25 }
  0x4f   : > { %s5752_s0 = scalar_lea.vmem %s5751_s25, 2048  ;;  %p5753_p3 = scmp.lt.s32.totalorder %s6168_s4, %s5751_s25 }
  0x50   : > { %p5748_p9 = pnand %p5746_p7, %p6126_p12  ;;  %p5754_p10 = scmp.lt.s32.totalorder %s5752_s0, %s5745_s2 }
  0x52   : > { %p5749_p0 = pneg %p5748_p9  ;;  %p5755_p5 = por %p5754_p10, %p5753_p3 }
  0x54   : > { %p5756_p6 = pnand %p5755_p5, %p5749_p0 }
  0x56   : > { %5759 = shalt.err (!%p5756_p6)
}
  0x57   : > { %s7002_s1 = smov 4   ;;  %s7003_s13 = smov 64  }
  0x58   : > { %5419 = dma.hbm_to_vmem [thread:$0]  (!%p6102_p8), %s6165_s14, 1024, %s6168_s4, %s6172_s15, %s7003_s13, %s7003_s13, %s7002_s1  }
  0x59   : > { %s6203_s2 = scalar_lea.hbm %s6960_s3, %s6100_s20  ;;  %s411_s27 = scalar_lea.vmem [#allocation3], %s6097_s19 }
  0x5a   : > { %s418_s25 = sshll.u32 %s411_s27, 4  ;;  %s408_s0 = scalar_lea.sflag [#allocation4], %s6094_s18  ;;  %s6206_s25 = int_to_ptr.vmem [resolvable:$true] %s418_s25 }
  0x5b   : > { %s5760_s6 = scalar_lea.hbm %s6203_s2, 1024  ;;  %s5765_s22 = scalar_lea.hbm %s6960_s3, 3072 }
  0x5c   : > { %p5761_p10 = scmp.ne.s32.totalorder %s6203_s2, %s5760_s6  ;;  %p5766_p13 = scmp.lt.u32.totalorder %s6203_s2, %s6960_s3 }
  0x5d   : > { %p5767_p1 = scmp.lt.u32.totalorder %s5765_s22, %s5760_s6  ;;  %p5769_p7 = scmp.lt.u32.totalorder %s5760_s6, %s6203_s2 }
  0x5e   : > { %p5763_p4 = pnand %p5761_p10, %p6126_p12 }
  0x5f   : > { %p5768_p2 = por %p5767_p1, %p5766_p13 }
  0x60   : > { %p5764_p11 = pneg %p5763_p4 }
  0x61   : > { %p5770_p9 = por %p5769_p7, %p5768_p2 }
  0x63   : > { %p5771_p0 = pnand %p5770_p9, %p5764_p11 }
  0x65   : > { %5774 = shalt.err (!%p5771_p0)
}
  0x66   : > { %s5775_s27 = scalar_lea.vmem %s6206_s25, 1024  ;;  %s5962_s4 = smov [#allocation3]  }
  0x67   : > { %p5776_p3 = scmp.ne.s32.totalorder %s6206_s25, %s5775_s27  ;;  %s5780_s14 = sshll.u32 %s5962_s4, 4  ;;  %s5781_s14 = int_to_ptr.vmem [resolvable:$false] %s5780_s14 }
  0x68   : > { %s5782_s10 = scalar_lea.vmem %s5781_s14, 2048  ;;  %p5783_p10 = scmp.lt.s32.totalorder %s6206_s25, %s5781_s14 }
  0x69   : > { %p5778_p5 = pnand %p5776_p3, %p6126_p12  ;;  %p5784_p4 = scmp.lt.s32.totalorder %s5782_s10, %s5775_s27 }
  0x6b   : > { %p5779_p6 = pneg %p5778_p5  ;;  %p5785_p13 = por %p5784_p4, %p5783_p10 }
  0x6d   : > { %p5786_p1 = pnand %p5785_p13, %p5779_p6 }
  0x6f   : > { %5789 = shalt.err (!%p5786_p1)
}
  0x70   : > { %5410 = dma.hbm_to_vmem [thread:$0]  (!%p6102_p8), %s6203_s2, 1024, %s6206_s25, %s408_s0, %s7003_s13, %s7003_s13, %s7002_s1  }
  0x71   : > { %s6239_s24 = scalar_lea.hbm %s6962_s5, %s6100_s20  ;;  %s453_s27 = scalar_lea.vmem [#allocation8], %s6097_s19 }
  0x72   : > { %s460_s4 = sshll.u32 %s453_s27, 4  ;;  %s4831_s14 = sshll.u32 %s6094_s18, 8  ;;  %s6242_s4 = int_to_ptr.vmem [resolvable:$true] %s460_s4 }
  0x73   : > { %s5790_s10 = scalar_lea.hbm %s6239_s24, 1024  ;;  %s5795_s0 = scalar_lea.hbm %s6962_s5, 3072 }
  0x74   : > { %p5791_p11 = scmp.ne.s32.totalorder %s6239_s24, %s5790_s10  ;;  %p5796_p9 = scmp.lt.u32.totalorder %s6239_s24, %s6962_s5 }
  0x75   : > { %p5797_p0 = scmp.lt.u32.totalorder %s5795_s0, %s5790_s10  ;;  %p5799_p5 = scmp.lt.u32.totalorder %s5790_s10, %s6239_s24 }
  0x76   : > { %p5793_p2 = pnand %p5791_p11, %p6126_p12 }
  0x77   : > { %p5798_p3 = por %p5797_p0, %p5796_p9 }
  0x78   : > { %p5794_p7 = pneg %p5793_p2 }
  0x79   : > { %p5800_p6 = por %p5799_p5, %p5798_p3 }
  0x7b   : > { %p5801_p10 = pnand %p5800_p6, %p5794_p7 }
  0x7d   : > { %5804 = shalt.err (!%p5801_p10)
}
  0x7e   : > { %s5805_s19 = scalar_lea.vmem %s6242_s4, 1024  ;;  %s5963_s22 = smov [#allocation8]  }
  0x7f   : > { %p5806_p4 = scmp.ne.s32.totalorder %s6242_s4, %s5805_s19  ;;  %s5810_s27 = sshll.u32 %s5963_s22, 4  ;;  %s5811_s27 = int_to_ptr.vmem [resolvable:$false] %s5810_s27 }
  0x80   : > { %s5812_s2 = scalar_lea.vmem %s5811_s27, 2048  ;;  %p5813_p11 = scmp.lt.s32.totalorder %s6242_s4, %s5811_s27 }
  0x81   : > { %p5808_p13 = pnand %p5806_p4, %p6126_p12  ;;  %p5814_p2 = scmp.lt.s32.totalorder %s5812_s2, %s5805_s19 }
  0x83   : > { %p5809_p1 = pneg %p5808_p13  ;;  %p5815_p9 = por %p5814_p2, %p5813_p11 }
  0x85   : > { %p5816_p0 = pnand %p5815_p9, %p5809_p1 }
  0x87   : > { %5819 = shalt.err (!%p5816_p0)
}
  0x88   : > { %5416 = dma.hbm_to_vmem [thread:$0]  (!%p6102_p8), %s6239_s24, 1024, %s6242_s4, %s6120_s16, %s7003_s13, %s7003_s13, %s7002_s1  }
  0x89   : > { %s5005_s10 = sshll.u32 %s5956_s28, 12  ;;  %s507_s6 = scalar_lea.vmem [#allocation11], %s4831_s14 }
  0x8a   : > { %s6276_s20 = scalar_lea.hbm %s6966_s9, %s5005_s10  ;;  %s514_s19 = sshll.u32 %s507_s6, 4  ;;  %s6280_s19 = int_to_ptr.vmem [resolvable:$true] %s514_s19 }
  0x8b   : > { %s5820_s22 = scalar_lea.hbm %s6276_s20, 4096  ;;  %s5825_s4 = scalar_lea.hbm %s6966_s9, 12288 }
  0x8c   : > { %p5821_p7 = scmp.ne.s32.totalorder %s6276_s20, %s5820_s22  ;;  %p5826_p6 = scmp.lt.u32.totalorder %s6276_s20, %s6966_s9 }
  0x8d   : > { %p5827_p10 = scmp.lt.u32.totalorder %s5825_s4, %s5820_s22  ;;  %p5829_p13 = scmp.lt.u32.totalorder %s5820_s22, %s6276_s20 }
  0x8e   : > { %p5823_p3 = pnand %p5821_p7, %p6126_p12 }
  0x8f   : > { %p5828_p4 = por %p5827_p10, %p5826_p6 }
  0x90   : > { %p5824_p5 = pneg %p5823_p3 }
  0x91   : > { %p5830_p1 = por %p5829_p13, %p5828_p4 }
  0x93   : > { %p5831_p11 = pnand %p5830_p1, %p5824_p5 }
  0x95   : > { %5834 = shalt.err (!%p5831_p11)
}
  0x96   : > { %s5835_s25 = scalar_lea.vmem %s6280_s19, 4096  ;;  %s5964_s0 = smov [#allocation11]  }
  0x97   : > { %p5836_p2 = scmp.ne.s32.totalorder %s6280_s19, %s5835_s25  ;;  %s5840_s6 = sshll.u32 %s5964_s0, 4  ;;  %s5841_s6 = int_to_ptr.vmem [resolvable:$false] %s5840_s6 }
  0x98   : > { %s5842_s16 = scalar_lea.vmem %s5841_s6, 8192  ;;  %p5843_p7 = scmp.lt.s32.totalorder %s6280_s19, %s5841_s6 }
  0x99   : > { %p5838_p9 = pnand %p5836_p2, %p6126_p12  ;;  %p5844_p3 = scmp.lt.s32.totalorder %s5842_s16, %s5835_s25 }
  0x9b   : > { %p5839_p0 = pneg %p5838_p9  ;;  %p5845_p6 = por %p5844_p3, %p5843_p7 }
  0x9d   : > { %p5846_p10 = pnand %p5845_p6, %p5839_p0 }
  0x9f   : > { %5849 = shalt.err (!%p5846_p10)
}
  0xa0   : > { %s5965_s22 = smov 256   ;;  %s5966_s24 = smov 16  }
  0xa1   : > { %5422 = dma.hbm_to_vmem [thread:$0]  (!%p6102_p8), %s6276_s20, 4096, %s6280_s19, %s6172_s15, %s5965_s22, %s5965_s22, %s5966_s24  }
  0xa2   : > { %s6309_s2 = scalar_lea.hbm %s6968_s11, %s5005_s10  ;;  %s535_s25 = scalar_lea.vmem [#allocation12], %s4831_s14 }
  0xa3   : > { %s542_s0 = sshll.u32 %s535_s25, 4  ;;  %s532_s6 = scalar_lea.sflag [#allocation13], %s6094_s18  ;;  %s6313_s0 = int_to_ptr.vmem [resolvable:$true] %s542_s0 }
  0xa4   : > { %s5850_s16 = scalar_lea.hbm %s6309_s2, 4096  ;;  %s5855_s10 = scalar_lea.hbm %s6968_s11, 12288 }
  0xa5   : > { %p5851_p5 = scmp.ne.s32.totalorder %s6309_s2, %s5850_s16  ;;  %p5856_p1 = scmp.lt.u32.totalorder %s6309_s2, %s6968_s11 }
  0xa6   : > { %p5857_p11 = scmp.lt.u32.totalorder %s5855_s10, %s5850_s16  ;;  %p5859_p9 = scmp.lt.u32.totalorder %s5850_s16, %s6309_s2 }
  0xa7   : > { %p5853_p4 = pnand %p5851_p5, %p6126_p12 }
  0xa8   : > { %p5858_p2 = por %p5857_p11, %p5856_p1 }
  0xa9   : > { %p5854_p13 = pneg %p5853_p4 }
  0xaa   : > { %p5860_p0 = por %p5859_p9, %p5858_p2 }
  0xac   : > { %p5861_p7 = pnand %p5860_p0, %p5854_p13 }
  0xae   : > { %5864 = shalt.err (!%p5861_p7)
}
  0xaf   : > { %s5865_s14 = scalar_lea.vmem %s6313_s0, 4096  ;;  %s5967_s22 = smov [#allocation12]  }
  0xb0   : > { %p5866_p3 = scmp.ne.s32.totalorder %s6313_s0, %s5865_s14  ;;  %s5870_s24 = sshll.u32 %s5967_s22, 4  ;;  %s5871_s24 = int_to_ptr.vmem [resolvable:$false] %s5870_s24 }
  0xb1   : > { %s5872_s4 = scalar_lea.vmem %s5871_s24, 8192  ;;  %p5873_p5 = scmp.lt.s32.totalorder %s6313_s0, %s5871_s24 }
  0xb2   : > { %p5868_p6 = pnand %p5866_p3, %p6126_p12  ;;  %p5874_p4 = scmp.lt.s32.totalorder %s5872_s4, %s5865_s14 }
  0xb4   : > { %p5869_p10 = pneg %p5868_p6  ;;  %p5875_p1 = por %p5874_p4, %p5873_p5 }
  0xb6   : > { %p5876_p11 = pnand %p5875_p1, %p5869_p10 }
  0xb8   : > { %5879 = shalt.err (!%p5876_p11)
}
  0xb9   : > { %5425 = dma.hbm_to_vmem [thread:$0]  (!%p6102_p8), %s6309_s2, 4096, %s6313_s0, %s532_s6, %s7003_s13, %s7003_s13, %s7002_s1  }
  0xba   : > { %p7004_p12 = scmp.ne.s32.totalorder %s6999_s30, 0 }
  0xbb   : > { %s562_s23 = sand.u32 (!%p7004_p12), 1, %s5948_s26   ;;  %p7005_p13 = scmp.ne.s32.totalorder (!%p7004_p12), %s6993_s17, 0 }
  0xbc   : > { %560 = sbr.rel (%p7004_p12) target bundleno = 6693 (0x1a25), region = 72  ;;  %s4838_s27 = sshll.u32 (!%p7004_p12), %s562_s23, 6 }
  0xbd   : > { %s563_s25 = scalar_lea.sflag (!%p7004_p12), [#allocation4], %s562_s23  ;;  %s6345_s16 = scalar_lea.vmem (!%p7004_p12), [#allocation3], %s4838_s27 }
  0xc3   : > { %5923 = dma.done.wait (%p7005_p13), %s563_s25, 1024  }
  0xc4   : > { %5925 = vsyncadd (%p7005_p13), %s563_s25, 4294966272  ;;  %s571_s18 = sand.u32 1, %s6072_s29   ;;  %s6352_s1 = scalar_lea.vmem [#allocation6], %s4838_s27 }
  0xc5   : > { %s572_s21 = scalar_lea.sflag [#allocation7], %s571_s18 }
  0xc6   : > { %5927 = dma.done.wait (%p7005_p13), %s572_s21, 2048  }
  0xc7   : > { %5929 = vsyncadd (%p7005_p13), %s572_s21, 4294965248  ;;  %s6358_s30 = scalar_lea.vmem [#allocation8], %s4838_s27  ;;  %s590_s13 = scalar_lea.sflag [#allocation10], %s571_s18 }
  0xc8   : > { %s6360_s2 = scalar_lea.vmem [#allocation9], %s4838_s27 }
  0xc9   : > { %5931 = dma.done.wait (%p7005_p13), %s590_s13, 5120  }
  0xca   : > { %5933 = vsyncadd (%p7005_p13), %s590_s13, 4294962176  ;;  %s4842_s0 = sshll.u32 %s562_s23, 8  ;;  %s608_s28 = scalar_lea.sflag [#allocation13], %s562_s23 }
  0xcb   : > { %s6366_s6 = scalar_lea.vmem [#allocation11], %s4842_s0  ;;  %s6368_s15 = scalar_lea.vmem [#allocation12], %s4842_s0 }
  0xcc   : > { %5935 = dma.done.wait (%p7005_p13), %s608_s28, 4096  }
  0xcd   : > { %5937 = vsyncadd (%p7005_p13), %s608_s28, 4294963200  ;;  %p687_p8 = scmp.lt.s32.totalorder %s6072_s29, 2  ;;  %s7006_s13 = sld [smem:[#allocation28_spill]] }
  0xce   : > { %p4845_p2 = scmp.ne.s32.totalorder %s6072_s29, 0 }
  0xcf   : > { %s6376_s10 = scalar_select %p687_p8, %s6072_s29, 2 }
  0xd0   : > { %704 = sbr.rel (%p4845_p2) target bundleno = 354 (0x162), region = 100  ;;  %s7007_s19 = sld [smem:[#allocation23_spill]] (!%p4845_p2)  ;;  %v5968_v1 = vmov (!%p4845_p2), 1   ;;  %v5969_v2 = vmov (!%p4845_p2), 0  }
  0xd1   : > { %s689_s14 = scalar_lea.vmem %s6964_s7, %s6376_s10  ;;  %s692_s4 = scalar_lea.vmem %s6965_s8, %s6376_s10  ;;  %5481 = vset.pattern.permute.xlu1 (!%p4845_p2), %v5968_v1  ;;  %5480 = vset.pattern.permute.xlu0 (!%p4845_p2), %v5969_v2 }
  0xd2   : > { %s4844_s23 = sshll.u32 %s6376_s10, 2  ;;  %s7008_s27 = sld [smem:[#allocation24_spill]] (!%p4845_p2) }
  0xd3   : > { %s6394_s0 = scalar_lea.vmem %s7006_s13, %s4844_s23  ;;  %s7010_s25 = sld [smem:[#allocation25_spill]] (!%p4845_p2) }
  0xd6   : > { %v705_v0 = vld [vmem:[%s7007_s19] sm:$0xff] (!%p4845_p2)  ;;  %v706_v3 = vld [vmem:[%s7007_s19 + $0x8] sm:$0xff] (!%p4845_p2) }
  0xd7   : > { %735 = vperm.xlu1 %5481, %v705_v0   ;;  %717 = vperm.xlu0 %5480, %v705_v0  }
  0xd8   : > { %s7009_s18 = smov %s7008_s27  ;;  %v4848_v4 = vld [vmem:[%s7008_s27 + $0x1] ss:$0 sm:$0xff] }
  0xd9   : > { %v4847_v5 = vld [vmem:[%s7009_s18] ss:$0 sm:$0xff] }
  0xda   : > { %v4846_v7 = vld [vmem:[%s7010_s25] ss:$0 sm:$0xff] }
  0xdb   : > { %739 = vperm.xlu1 %5481, %v706_v3   ;;  %722 = vperm.xlu0 %5480, %v706_v3  }
  0xdf   : > { %5482 = vset.pattern.permute.xlu0 %v5968_v1 }
 0x156   : > { %v736_v6 = vpop.permute.xlu1 %735  ;;  %v718_v8 = vpop.permute.xlu0 %717 }
 0x157   : > { %v746_v9 = vmul.f32 %v4848_v4, %v736_v6  ;;  %v729_v10 = vmul.f32 %v4847_v5, %v718_v8 }
 0x159   : > { %v731_v11 = vadd.f32 %v4846_v7, %v729_v10 }
 0x15a   : > { %v740_v12 = vpop.permute.xlu1 %739  ;;  %v723_v13 = vpop.permute.xlu0 %722 }
 0x15b   : > { %v748_v14 = vadd.f32 %v746_v9, %v731_v11  ;;  %v730_v15 = vmul.f32 %v4847_v5, %v723_v13  ;;  %v747_v16 = vmul.f32 %v4848_v4, %v740_v12 }
 0x15d   : > { %750 = vst [vmem:[#allocation2] sm:$0xff] %v748_v14  ;;  %v732_v17 = vadd.f32 %v4846_v7, %v730_v15 }
 0x15f   : > { %v749_v18 = vadd.f32 %v747_v16, %v732_v17 }
 0x161   : > { %751 = vst [vmem:[#allocation2 + $0x8] sm:$0xff] %v749_v18 }
 0x162 PF: > { %v5518_v19 = vld [vmem:[%s6352_s1] sm:$0xff]   ;;  %v5970_v20 = vmov 0.0   ;;  %v5520_v22 = vld [vmem:[%s6352_s1 + $0x8] sm:$0xff]   ;;  %vm5971_vm0 = vmmov 0   ;;  %v5522_v24 = vld [vmem:[%s6352_s1 + $0x10] sm:$0xff]   ;;  %vm1072_vm1 = vcmask 130048  }
 0x163   : > { %5171 = vmatprep.subr.bf16.mxu1 %v5970_v20  ;;  %5151 = vmatprep.subr.bf16.mxu0 %v5970_v20  ;;  %v5519_v21 = vld [vmem:[%s6345_s16] sm:$0xff]   ;;  %v5521_v23 = vld [vmem:[%s6345_s16 + $0x8] sm:$0xff]   ;;  %v5523_v25 = vld [vmem:[%s6345_s16 + $0x10] sm:$0xff]   ;;  %vm1225_vm2 = vcmask 64512   ;;  %s5975_s25 = smov 64   ;;  %s5976_s22 = smov 48  }
 0x164   : > { %5172 = vmatpush3.bf16.msra.mxu1 %v5518_v19  ;;  %5187 = vmatprep.mubr.msk.bf16.mxu1 %vm5971_vm0, %v5970_v20  ;;  %v5524_v26 = vld [vmem:[%s6352_s1 + $0x18] sm:$0xff]   ;;  %v5526_v28 = vld [vmem:[%s6352_s1 + $0x20] sm:$0xff]   ;;  %v5528_v30 = vld [vmem:[%s6352_s1 + $0x28] sm:$0xff]   ;;  %s5977_s24 = smov 32   ;;  %s5978_s23 = smov 16   ;;  %vm3764_vm3 = vcmask 261120  }
 0x165   : > { %5152 = vmatpush3.bf16.msra.mxu0 %v5519_v21  ;;  %5173 = vmatprep.subr.bf16.mxu1 %v5970_v20  ;;  %v5525_v27 = vld [vmem:[%s6345_s16 + $0x18] sm:$0xff]   ;;  %v5527_v29 = vld [vmem:[%s6345_s16 + $0x20] sm:$0xff]   ;;  %v5529_v31 = vld [vmem:[%s6345_s16 + $0x28] sm:$0xff]   ;;  %vm3767_vm4 = vcmask 392192   ;;  %vm3770_vm5 = vcmask 523264   ;;  %vm3773_vm6 = vcmask 654336  }
 0x166   : > { %5153 = vmatprep.subr.bf16.mxu0 %v5970_v20  ;;  %5167 = vmatprep.mubr.msk.bf16.mxu0 %vm5971_vm0, %v5970_v20  ;;  %v5530_v32 = vld [vmem:[%s6352_s1 + $0x30] sm:$0xff]   ;;  %v5532_v34 = vld [vmem:[%s6352_s1 + $0x38] sm:$0xff]   ;;  %v5534_v47 = vld [vmem:[%s6358_s30] sm:$0xff]   ;;  %s5973_s1 = smov 96   ;;  %vm3776_vm7 = vcmask 785408   ;;  %vm3779_vm8 = vcmask 916480  }
 0x167   : > { %v5531_v33 = vld [vmem:[%s6345_s16 + $0x30] sm:$0xff]   ;;  %v5533_v37 = vld [vmem:[%s6345_s16 + $0x38] sm:$0xff]   ;;  %s5972_s16 = smov 112   ;;  %v5535_v48 = vld [vmem:[%s6358_s30 + $0x8] sm:$0xff]   ;;  %p4996_p9 = scmp.ne.s32.totalorder %s6072_s29, 2 }
 0x168   : > { %5174 = vmatpush3.bf16.msra.mxu1 %v5520_v22  ;;  %v754_v35 = vld [vmem:[#allocation2] sm:$0xff]  ;;  %v755_v36 = vld [vmem:[#allocation2 + $0x8] sm:$0xff]  ;;  %v5538_v51 = vld [vmem:[%s6358_s30 + $0x20] sm:$0xff]  }
 0x169   : > { %5154 = vmatpush3.bf16.msra.mxu0 %v5521_v23  ;;  %5175 = vmatprep.subr.bf16.mxu1 %v5970_v20  ;;  %v756_v38 = vpack.c.bf16 %v755_v36, %v754_v35  ;;  %v5536_v49 = vld [vmem:[%s6358_s30 + $0x10] sm:$0xff]   ;;  %v5537_v50 = vld [vmem:[%s6358_s30 + $0x18] sm:$0xff]   ;;  %v5539_v52 = vld [vmem:[%s6358_s30 + $0x28] sm:$0xff]  }
 0x16a   : > { %5155 = vmatprep.subr.bf16.mxu0 %v5970_v20  ;;  %v5540_v53 = vld [vmem:[%s6358_s30 + $0x30] sm:$0xff]   ;;  %v5541_v54 = vld [vmem:[%s6358_s30 + $0x38] sm:$0xff]   ;;  %s5974_s30 = smov 80  }
 0x16c   : > { %5176 = vmatpush3.bf16.msra.mxu1 %v5522_v24 }
 0x16d   : > { %5156 = vmatpush3.bf16.msra.mxu0 %v5523_v25  ;;  %5177 = vmatprep.subr.bf16.mxu1 %v5970_v20 }
 0x16e   : > { %5157 = vmatprep.subr.bf16.mxu0 %v5970_v20 }
 0x170   : > { %5178 = vmatpush3.bf16.msra.mxu1 %v5524_v26 }
 0x171   : > { %5158 = vmatpush3.bf16.msra.mxu0 %v5525_v27  ;;  %5179 = vmatprep.subr.bf16.mxu1 %v5970_v20 }
 0x172   : > { %5159 = vmatprep.subr.bf16.mxu0 %v5970_v20 }
 0x174   : > { %5180 = vmatpush3.bf16.msra.mxu1 %v5526_v28 }
 0x175   : > { %5160 = vmatpush3.bf16.msra.mxu0 %v5527_v29  ;;  %5181 = vmatprep.subr.bf16.mxu1 %v5970_v20 }
 0x176   : > { %5161 = vmatprep.subr.bf16.mxu0 %v5970_v20 }
 0x178   : > { %5182 = vmatpush3.bf16.msra.mxu1 %v5528_v30 }
 0x179   : > { %5162 = vmatpush3.bf16.msra.mxu0 %v5529_v31  ;;  %5183 = vmatprep.subr.bf16.mxu1 %v5970_v20 }
 0x17a   : > { %5163 = vmatprep.subr.bf16.mxu0 %v5970_v20 }
 0x17c   : > { %5184 = vmatpush3.bf16.msra.mxu1 %v5530_v32 }
 0x17d   : > { %5164 = vmatpush3.bf16.msra.mxu0 %v5531_v33  ;;  %5185 = vmatprep.subr.bf16.mxu1 %v5970_v20 }
 0x17e   : > { %5165 = vmatprep.subr.bf16.mxu0 %v5970_v20 }
 0x180   : > { %5186 = vmatpush3.bf16.msra.mxu1 %v5532_v34 }
 0x181   : > { %5166 = vmatpush3.bf16.msra.mxu0 %v5533_v37  ;;  %5211 = vmatprep.subr.mxu1 %v5970_v20 }
 0x182   : > { %5191 = vmatprep.subr.bf16.mxu0 %v5970_v20 }
 0x183   : > { %5188 = vmatmul.mubr.bf16.vlgmr.msra.gmra.mrb[0].mxu1 %v756_v38 }
 0x184   : > { %5168 = vmatmul.mubr.bf16.vlgmr.msra.gmra.mrb[0].mxu0 %v756_v38  ;;  %5213 = vmatprep.mubr.msk.f32.mxu1 %vm5971_vm0, %v5970_v20 }
 0x185   : > { %5207 = vmatprep.mubr.msk.bf16.mxu0 %vm5971_vm0, %v5970_v20  ;;  %5192 = vmatpush3.bf16.msra.mxu0 %v5534_v47 }
 0x186   : > { %5193 = vmatprep.subr.bf16.mxu0 %v5970_v20 }
 0x189   : > { %5194 = vmatpush3.bf16.msra.mxu0 %v5535_v48 }
 0x18a   : > { %5195 = vmatprep.subr.bf16.mxu0 %v5970_v20 }
 0x18d   : > { %5196 = vmatpush3.bf16.msra.mxu0 %v5536_v49 }
 0x18e   : > { %5197 = vmatprep.subr.bf16.mxu0 %v5970_v20 }
 0x191   : > { %5198 = vmatpush3.bf16.msra.mxu0 %v5537_v50 }
 0x192   : > { %5199 = vmatprep.subr.bf16.mxu0 %v5970_v20 }
 0x195   : > { %5200 = vmatpush3.bf16.msra.mxu0 %v5538_v51 }
 0x196   : > { %5201 = vmatprep.subr.bf16.mxu0 %v5970_v20 }
 0x199   : > { %5202 = vmatpush3.bf16.msra.mxu0 %v5539_v52 }
 0x19a   : > { %5203 = vmatprep.subr.bf16.mxu0 %v5970_v20 }
 0x19d   : > { %5204 = vmatpush3.bf16.msra.mxu0 %v5540_v53 }
 0x19e   : > { %5205 = vmatprep.subr.bf16.mxu0 %v5970_v20 }
 0x1a1   : > { %5206 = vmatpush3.bf16.msra.mxu0 %v5541_v54 }
 0x1a2   : > { %5291 = vmatprep.subr.mxu0 %v5970_v20 }
 0x1a4   : > { %5208 = vmatmul.mubr.bf16.vlgmr.msra.gmra.mrb[4].mxu0 %v756_v38 }
 0x1a5   : > { %5293 = vmatprep.mubr.msk.f32.mxu0 %vm5971_vm0, %v5970_v20 }
 0x256   : > { %v6454_v39 = vpop.f32.mrb[0].mxu1 }
 0x257   : > { %v5189_v40 = vpop.f32.mrb[1].mxu1  ;;  %5212 = vmatpush3.xpose.msk.msra.mxu1 %vm1072_vm1, %v6454_v39  ;;  %v6458_v41 = vpop.f32.mrb[0].mxu0 }
 0x258   : > { %v6460_v42 = vpop.f32.mrb[2].mxu1  ;;  %5216 = vmatprep.subr.mxu1 %v5970_v20  ;;  %v5169_v43 = vpop.f32.mrb[1].mxu0  ;;  %1394 = vrot.lane.b32.xlu1 %v6458_v41, %s5972_s16 }
 0x259   : > { %v5190_v44 = vpop.f32.mrb[3].mxu1  ;;  %v6465_v45 = vpop.f32.mrb[2].mxu0 }
 0x25a   : > { %5214 = vmatmul.mubr.msk.f32.vlgmr.msra.gmra.mrb[4].mxu1 %vm1072_vm1, %v6458_v41  ;;  %v5170_v46 = vpop.f32.mrb[3].mxu0 }
 0x25b   : > { %5217 = vmatpush3.xpose.msk.msra.mxu1 %vm1072_vm1, %v6460_v42  ;;  %5218 = vmatprep.mubr.msk.f32.mxu1 %vm5971_vm0, %v5970_v20 }
 0x25c   : > { %5221 = vmatprep.subr.mxu1 %v5970_v20 }
 0x25e   : > { %5219 = vmatmul.mubr.msk.f32.vlgmr.msra.gmra.mrb[6].mxu1 %vm1072_vm1, %v6465_v45 }
 0x25f   : > { %5223 = vmatprep.mubr.msk.f32.mxu1 %vm5971_vm0, %v5970_v20 }
 0x277   : > { %v6504_v7 = vpop.f32.mrb[4].mxu0 }
 0x278   : > { %v5209_v8 = vpop.f32.mrb[5].mxu0  ;;  %5222 = vmatpush3.msra.mxu1 %v6504_v7 }
 0x279   : > { %v6507_v9 = vpop.f32.mrb[6].mxu0  ;;  %5226 = vmatprep.subr.mxu1 %v5970_v20 }
 0x27a   : > { %v5210_v10 = vpop.f32.mrb[7].mxu0 }
 0x2ca   : > { %v1395_v11 = vpop.permute.xlu1 %1394 }
 0x32d   : > { %v1145_v55 = vpop.f32.mrb[4].mxu1 }
 0x32e   : > { %v1226_v56 = vsel %vm1225_vm2, %v1145_v55, -inf  ;;  %v5215_v57 = vpop.f32.mrb[5].mxu1 }
 0x32f   : > { %1227 = vmax.xlane.f32.xlu0 %v1226_v56 }
 0x331   : > { %v1221_v58 = vpop.f32.mrb[6].mxu1 }
 0x332   : > { %v5220_v59 = vpop.f32.mrb[7].mxu1  ;;  %v1229_v60 = vsel %vm1225_vm2, %v1221_v58, -inf }
 0x333   : > { %1230 = vmax.xlane.f32.xlu0 %v1229_v60 }
 0x349   : > { %1396 = vrot.lane.b32.xlu0 %v6454_v39, %s5972_s16 }
 0x3bc   : > { %v1228_v61 = vpop.xlane.xlu0 %1227 }
 0x3bd   : > { %v1232_v62 = vsub.f32 %v1145_v55, %v1228_v61 }
 0x3bf   : > { %v1234_v63 = vmul.f32 1.442695, %v1232_v62 }
 0x3c0   : > { %v1231_v0 = vpop.xlane.xlu0 %1230 }
 0x3c1   : > { %5630 = vpow2.f32 %v1234_v63  ;;  %v1233_v1 = vsub.f32 %v1221_v58, %v1231_v0 }
 0x3c3   : > { %v1236_v2 = vmul.f32 1.442695, %v1233_v1 }
 0x3c4   : > { %v1397_v18 = vpop.permute.xlu0 %1396 }
 0x3c5   : > { %5632 = vpow2.f32 %v1236_v2 }
 0x3cb   : > { %v5631_v3 = vpop.eup %5630 }
 0x3cc   : > { %v1238_v4 = vsel %vm1225_vm2, %v5631_v3, 0.0 }
 0x3cd   : > { %1239 = vadd.xlane.f32.xlu1 %v1238_v4 }
 0x3cf   : > { %v5633_v5 = vpop.eup %5632 }
 0x3d0   : > { %v1241_v6 = vsel %vm1225_vm2, %v5633_v5, 0.0 }
 0x3d1   : > { %1242 = vadd.xlane.f32.xlu1 %v1241_v6 }
 0x3e2   : > { %1474 = vrot.lane.b32.xlu1 %v6460_v42, %s5972_s16 }
 0x3e6   : > { %1472 = vrot.lane.b32.xlu1 %v6465_v45, %s5972_s16 }
 0x45a   : > { %v1240_v12 = vpop.xlane.xlu1 %1239 }
 0x45b   : > { %5634 = vrcp.f32 %v1240_v12 }
 0x45e   : > { %v1243_v13 = vpop.xlane.xlu1 %1242 }
 0x45f   : > { %5636 = vrcp.f32 %v1243_v13 }
 0x462   : > { %v1475_v19 = vpop.permute.xlu1 %1474 }
 0x465   : > { %v5635_v14 = vpop.eup %5634 }
 0x466   : > { %v1246_v15 = vmul.f32 %v5635_v14, %v5631_v3  ;;  %v1473_v21 = vpop.permute.xlu1 %1472 }
 0x468   : > { %5224 = vmatmul.mubr.msk.f32.vlgmr.msra.gmra.mrb[8].mxu1 %vm1225_vm2, %v1246_v15 }
 0x469   : > { %v5637_v16 = vpop.eup %5636  ;;  %5227 = vmatpush3.msra.mxu1 %v6507_v9  ;;  %5228 = vmatprep.mubr.msk.f32.mxu1 %vm5971_vm0, %v5970_v20 }
 0x46a   : > { %v1247_v17 = vmul.f32 %v5637_v16, %v5633_v5  ;;  %5231 = vmatprep.subr.mxu1 %v5970_v20 }
 0x46c   : > { %5229 = vmatmul.mubr.msk.f32.vlgmr.msra.gmra.mrb[10].mxu1 %vm1225_vm2, %v1247_v17 }
 0x46d   : > { %5233 = vmatprep.mubr.msk.f32.mxu1 %vm5971_vm0, %v5970_v20 }
 0x470   : > { %5232 = vmatpush3.xpose.msk.msra.mxu1 %vm1072_vm1, %v1397_v18 }
 0x471   : > { %5236 = vmatprep.subr.mxu1 %v5970_v20 }
 0x473   : > { %5234 = vmatmul.mubr.msk.f32.vlgmr.msra.gmra.mrb[12].mxu1 %vm1072_vm1, %v1395_v11 }
 0x474   : > { %5237 = vmatpush3.xpose.msk.msra.mxu1 %vm1072_vm1, %v1475_v19  ;;  %5238 = vmatprep.mubr.msk.f32.mxu1 %vm5971_vm0, %v5970_v20 }
 0x475   : > { %5241 = vmatprep.subr.mxu1 %v5970_v20 }
 0x477   : > { %5239 = vmatmul.mubr.msk.f32.vlgmr.msra.gmra.mrb[14].mxu1 %vm1072_vm1, %v1473_v21 }
 0x478   : > { %5243 = vmatprep.mubr.msk.f32.mxu1 %vm5971_vm0, %v5970_v20 }
 0x53b   : > { %v6530_v22 = vpop.f32.mrb[8].mxu1 }
 0x53c   : > { %v5225_v23 = vpop.f32.mrb[9].mxu1 }
 0x53f   : > { %v6532_v24 = vpop.f32.mrb[10].mxu1 }
 0x540   : > { %v5230_v25 = vpop.f32.mrb[11].mxu1 }
 0x546   : > { %v1468_v26 = vpop.f32.mrb[12].mxu1 }
 0x547   : > { %v5235_v27 = vpop.f32.mrb[13].mxu1  ;;  %v1550_v28 = vsel %vm1225_vm2, %v1468_v26, -inf }
 0x548   : > { %1551 = vmax.xlane.f32.xlu0 %v1550_v28 }
 0x54a   : > { %v1546_v29 = vpop.f32.mrb[14].mxu1 }
 0x54b   : > { %v5240_v30 = vpop.f32.mrb[15].mxu1  ;;  %v1553_v31 = vsel %vm1225_vm2, %v1546_v29, -inf }
 0x54c   : > { %1554 = vmax.xlane.f32.xlu1 %v1553_v31 }
 0x55d   : > { %1650 = vrot.lane.b32.xlu1 %v6507_v9, %s5972_s16 }
 0x561   : > { %1728 = vrot.lane.b32.xlu1 %v6454_v39, %s5973_s1 }
 0x565   : > { %1726 = vrot.lane.b32.xlu1 %v6458_v41, %s5973_s1 }
 0x569   : > { %1804 = vrot.lane.b32.xlu1 %v6465_v45, %s5973_s1 }
 0x5d5   : > { %v1552_v32 = vpop.xlane.xlu0 %1551 }
 0x5d6   : > { %v1556_v33 = vsub.f32 %v1468_v26, %v1552_v32 }
 0x5d8   : > { %v1558_v34 = vmul.f32 1.442695, %v1556_v33 }
 0x5d9   : > { %v1555_v35 = vpop.xlane.xlu1 %1554 }
 0x5da   : > { %5638 = vpow2.f32 %v1558_v34  ;;  %v1557_v36 = vsub.f32 %v1546_v29, %v1555_v35 }
 0x5dc   : > { %v1560_v37 = vmul.f32 1.442695, %v1557_v36 }
 0x5dd   : > { %v1651_v49 = vpop.permute.xlu1 %1650 }
 0x5de   : > { %5640 = vpow2.f32 %v1560_v37 }
 0x5e1   : > { %v1729_v53 = vpop.permute.xlu1 %1728 }
 0x5e4   : > { %v5639_v38 = vpop.eup %5638 }
 0x5e5   : > { %v1562_v40 = vsel %vm1225_vm2, %v5639_v38, 0.0  ;;  %v1727_v55 = vpop.permute.xlu1 %1726 }
 0x5e6   : > { %1563 = vadd.xlane.f32.xlu0 %v1562_v40 }
 0x5e8   : > { %v5641_v43 = vpop.eup %5640 }
 0x5e9   : > { %v1565_v44 = vsel %vm1225_vm2, %v5641_v43, 0.0  ;;  %v1805_v57 = vpop.permute.xlu1 %1804 }
 0x5ea   : > { %1566 = vadd.xlane.f32.xlu0 %v1565_v44 }
 0x600   : > { %1573 = vrot.lane.b32.xlu0 %v6504_v7, %s5972_s16 }
 0x604   : > { %1806 = vrot.lane.b32.xlu0 %v6460_v42, %s5973_s1 }
 0x673   : > { %v1564_v46 = vpop.xlane.xlu0 %1563 }
 0x674   : > { %5642 = vrcp.f32 %v1564_v46 }
 0x677   : > { %v1567_v47 = vpop.xlane.xlu0 %1566 }
 0x678   : > { %5644 = vrcp.f32 %v1567_v47 }
 0x67b   : > { %v1574_v48 = vpop.permute.xlu0 %1573 }
 0x67c   : > { %5242 = vmatpush3.msra.mxu1 %v1574_v48 }
 0x67d   : > { %5246 = vmatprep.subr.mxu1 %v5970_v20 }
 0x67e   : > { %v5643_v50 = vpop.eup %5642 }
 0x67f   : > { %v1570_v51 = vmul.f32 %v5643_v50, %v5639_v38  ;;  %v1807_v56 = vpop.permute.xlu0 %1806 }
 0x681   : > { %5244 = vmatmul.mubr.msk.f32.vlgmr.msra.gmra.mrb[16].mxu1 %vm1225_vm2, %v1570_v51 }
 0x682   : > { %v5645_v52 = vpop.eup %5644  ;;  %5247 = vmatpush3.msra.mxu1 %v1651_v49  ;;  %5248 = vmatprep.mubr.msk.f32.mxu1 %vm5971_vm0, %v5970_v20 }
 0x683   : > { %v1571_v54 = vmul.f32 %v5645_v52, %v5641_v43  ;;  %5251 = vmatprep.subr.mxu1 %v5970_v20 }
 0x685   : > { %5249 = vmatmul.mubr.msk.f32.vlgmr.msra.gmra.mrb[18].mxu1 %vm1225_vm2, %v1571_v54 }
 0x686   : > { %5253 = vmatprep.mubr.msk.f32.mxu1 %vm5971_vm0, %v5970_v20 }
 0x689   : > { %5252 = vmatpush3.xpose.msk.msra.mxu1 %vm1072_vm1, %v1729_v53 }
 0x68a   : > { %5256 = vmatprep.subr.mxu1 %v5970_v20 }
 0x68c   : > { %5254 = vmatmul.mubr.msk.f32.vlgmr.msra.gmra.mrb[20].mxu1 %vm1072_vm1, %v1727_v55 }
 0x68d   : > { %5257 = vmatpush3.xpose.msk.msra.mxu1 %vm1072_vm1, %v1807_v56  ;;  %5258 = vmatprep.mubr.msk.f32.mxu1 %vm5971_vm0, %v5970_v20 }
 0x68e   : > { %5261 = vmatprep.subr.mxu1 %v5970_v20 }
 0x690   : > { %5259 = vmatmul.mubr.msk.f32.vlgmr.msra.gmra.mrb[22].mxu1 %vm1072_vm1, %v1805_v57 }
 0x691   : > { %5263 = vmatprep.mubr.msk.f32.mxu1 %vm5971_vm0, %v5970_v20 }
 0x754   : > { %v6568_v58 = vpop.f32.mrb[16].mxu1 }
 0x755   : > { %v5245_v59 = vpop.f32.mrb[17].mxu1 }
 0x758   : > { %v6570_v60 = vpop.f32.mrb[18].mxu1 }
 0x759   : > { %v5483_v61 = vpack.i.bf16 %v6570_v60, %v6568_v58  ;;  %v5250_v62 = vpop.f32.mrb[19].mxu1 }
 0x75f   : > { %v1800_v63 = vpop.f32.mrb[20].mxu1 }
 0x760   : > { %v5255_v0 = vpop.f32.mrb[21].mxu1  ;;  %v1882_v1 = vsel %vm1225_vm2, %v1800_v63, -inf }
 0x761   : > { %1883 = vmax.xlane.f32.xlu0 %v1882_v1 }
 0x763   : > { %v1878_v2 = vpop.f32.mrb[22].mxu1 }
 0x764   : > { %v5260_v3 = vpop.f32.mrb[23].mxu1  ;;  %v1885_v4 = vsel %vm1225_vm2, %v1878_v2, -inf }
 0x765   : > { %1886 = vmax.xlane.f32.xlu1 %v1885_v4 }
 0x776   : > { %1980 = vrot.lane.b32.xlu1 %v6507_v9, %s5973_s1 }
 0x77a   : > { %2058 = vrot.lane.b32.xlu1 %v6454_v39, %s5974_s30 }
 0x77e   : > { %2056 = vrot.lane.b32.xlu1 %v6458_v41, %s5974_s30 }
 0x782   : > { %2134 = vrot.lane.b32.xlu1 %v6465_v45, %s5974_s30 }
 0x7ee   : > { %v1884_v5 = vpop.xlane.xlu0 %1883 }
 0x7ef   : > { %v1888_v6 = vsub.f32 %v1800_v63, %v1884_v5 }
 0x7f1   : > { %v1890_v8 = vmul.f32 1.442695, %v1888_v6 }
 0x7f2   : > { %v1887_v10 = vpop.xlane.xlu1 %1886 }
 0x7f3   : > { %5646 = vpow2.f32 %v1890_v8  ;;  %v1889_v11 = vsub.f32 %v1878_v2, %v1887_v10 }
 0x7f5   : > { %v1892_v12 = vmul.f32 1.442695, %v1889_v11 }
 0x7f6   : > { %v1981_v21 = vpop.permute.xlu1 %1980 }
 0x7f7   : > { %5648 = vpow2.f32 %v1892_v12 }
 0x7fa   : > { %v2059_v27 = vpop.permute.xlu1 %2058 }
 0x7fd   : > { %v5647_v13 = vpop.eup %5646 }
 0x7fe   : > { %v1894_v14 = vsel %vm1225_vm2, %v5647_v13, 0.0  ;;  %v2057_v29 = vpop.permute.xlu1 %2056 }
 0x7ff   : > { %1895 = vadd.xlane.f32.xlu0 %v1894_v14 }
 0x801   : > { %v5649_v15 = vpop.eup %5648 }
 0x802   : > { %v1897_v16 = vsel %vm1225_vm2, %v5649_v15, 0.0  ;;  %v2135_v31 = vpop.permute.xlu1 %2134 }
 0x803   : > { %1898 = vadd.xlane.f32.xlu0 %v1897_v16 }
 0x819   : > { %1904 = vrot.lane.b32.xlu0 %v6504_v7, %s5973_s1 }
 0x81d   : > { %2136 = vrot.lane.b32.xlu0 %v6460_v42, %s5974_s30 }
 0x88c   : > { %v1896_v17 = vpop.xlane.xlu0 %1895 }
 0x88d   : > { %5650 = vrcp.f32 %v1896_v17 }
 0x890   : > { %v1899_v18 = vpop.xlane.xlu0 %1898 }
 0x891   : > { %5652 = vrcp.f32 %v1899_v18 }
 0x894   : > { %v1905_v19 = vpop.permute.xlu0 %1904 }
 0x895   : > { %5262 = vmatpush3.msra.mxu1 %v1905_v19 }
 0x896   : > { %5266 = vmatprep.subr.mxu1 %v5970_v20 }
 0x897   : > { %v5651_v23 = vpop.eup %5650 }
 0x898   : > { %v1902_v25 = vmul.f32 %v5651_v23, %v5647_v13  ;;  %v2137_v30 = vpop.permute.xlu0 %2136 }
 0x89a   : > { %5264 = vmatmul.mubr.msk.f32.vlgmr.msra.gmra.mrb[24].mxu1 %vm1225_vm2, %v1902_v25 }
 0x89b   : > { %v5653_v26 = vpop.eup %5652  ;;  %5267 = vmatpush3.msra.mxu1 %v1981_v21  ;;  %5268 = vmatprep.mubr.msk.f32.mxu1 %vm5971_vm0, %v5970_v20 }
 0x89c   : > { %v1903_v28 = vmul.f32 %v5653_v26, %v5649_v15  ;;  %5271 = vmatprep.subr.mxu1 %v5970_v20 }
 0x89e   : > { %5269 = vmatmul.mubr.msk.f32.vlgmr.msra.gmra.mrb[26].mxu1 %vm1225_vm2, %v1903_v28 }
 0x89f   : > { %5273 = vmatprep.mubr.msk.f32.mxu1 %vm5971_vm0, %v5970_v20 }
 0x8a2   : > { %5272 = vmatpush3.xpose.msk.msra.mxu1 %vm1072_vm1, %v2059_v27 }
 0x8a3   : > { %5276 = vmatprep.subr.mxu1 %v5970_v20 }
 0x8a5   : > { %5274 = vmatmul.mubr.msk.f32.vlgmr.msra.gmra.mrb[28].mxu1 %vm1072_vm1, %v2057_v29 }
 0x8a6   : > { %5277 = vmatpush3.xpose.msk.msra.mxu1 %vm1072_vm1, %v2137_v30  ;;  %5278 = vmatprep.mubr.msk.f32.mxu1 %vm5971_vm0, %v5970_v20 }
 0x8a7   : > { %5281 = vmatprep.subr.mxu1 %v5970_v20 }
 0x8a9   : > { %5279 = vmatmul.mubr.msk.f32.vlgmr.msra.gmra.mrb[30].mxu1 %vm1072_vm1, %v2135_v31 }
 0x8aa   : > { %5283 = vmatprep.mubr.msk.f32.mxu1 %vm5971_vm0, %v5970_v20 }
 0x96d   : > { %v6608_v32 = vpop.f32.mrb[24].mxu1 }
 0x96e   : > { %v5265_v33 = vpop.f32.mrb[25].mxu1 }
 0x971   : > { %v6610_v34 = vpop.f32.mrb[26].mxu1 }
 0x972   : > { %v5488_v35 = vpack.i.bf16 %v6610_v34, %v6608_v32  ;;  %v5270_v36 = vpop.f32.mrb[27].mxu1 }
 0x978   : > { %v2130_v37 = vpop.f32.mrb[28].mxu1 }
 0x979   : > { %v5275_v38 = vpop.f32.mrb[29].mxu1  ;;  %v2212_v40 = vsel %vm1225_vm2, %v2130_v37, -inf }
 0x97a   : > { %2213 = vmax.xlane.f32.xlu0 %v2212_v40 }
 0x97c   : > { %v2208_v43 = vpop.f32.mrb[30].mxu1 }
 0x97d   : > { %v5280_v44 = vpop.f32.mrb[31].mxu1  ;;  %v2215_v46 = vsel %vm1225_vm2, %v2208_v43, -inf }
 0x97e   : > { %2216 = vmax.xlane.f32.xlu1 %v2215_v46 }
 0x98f   : > { %2310 = vrot.lane.b32.xlu1 %v6507_v9, %s5974_s30 }
 0x993   : > { %2388 = vrot.lane.b32.xlu1 %v6454_v39, %s5975_s25 }
 0x997   : > { %2466 = vrot.lane.b32.xlu1 %v6460_v42, %s5975_s25 }
 0x99b   : > { %2464 = vrot.lane.b32.xlu1 %v6465_v45, %s5975_s25 }
 0xa07   : > { %v2214_v47 = vpop.xlane.xlu0 %2213 }
 0xa08   : > { %v2218_v48 = vsub.f32 %v2130_v37, %v2214_v47 }
 0xa0a   : > { %v2220_v49 = vmul.f32 1.442695, %v2218_v48 }
 0xa0b   : > { %v2217_v50 = vpop.xlane.xlu1 %2216 }
 0xa0c   : > { %5654 = vpow2.f32 %v2220_v49  ;;  %v2219_v55 = vsub.f32 %v2208_v43, %v2217_v50 }
 0xa0e   : > { %v2222_v56 = vmul.f32 1.442695, %v2219_v55 }
 0xa0f   : > { %v2311_v51 = vpop.permute.xlu1 %2310 }
 0xa10   : > { %5656 = vpow2.f32 %v2222_v56 }
 0xa13   : > { %v2389_v52 = vpop.permute.xlu1 %2388 }
 0xa14   : > { %5292 = vmatpush3.xpose.msk.msra.mxu0 %vm1072_vm1, %v2389_v52 }
 0xa15   : > { %5301 = vmatprep.subr.mxu0 %v5970_v20 }
 0xa16   : > { %v5655_v53 = vpop.eup %5654 }
 0xa17   : > { %v2224_v54 = vsel %vm1225_vm2, %v5655_v53, 0.0  ;;  %v2467_v5 = vpop.permute.xlu1 %2466 }
 0xa18   : > { %2225 = vadd.xlane.f32.xlu0 %v2224_v54 }
 0xa1a   : > { %v5657_v57 = vpop.eup %5656 }
 0xa1b   : > { %v2227_v59 = vsel %vm1225_vm2, %v5657_v57, 0.0  ;;  %v2465_v8 = vpop.permute.xlu1 %2464 }
 0xa2e   : > { %2234 = vrot.lane.b32.xlu0 %v6504_v7, %s5974_s30 }
 0xa4d   : > { %2228 = vadd.xlane.f32.xlu0 %v2227_v59 }
 0xa63   : > { %2386 = vrot.lane.b32.xlu0 %v6458_v41, %s5975_s25 }
 0xaa5   : > { %v2226_v62 = vpop.xlane.xlu0 %2225 }
 0xaa6   : > { %5658 = vrcp.f32 %v2226_v62 }
 0xaa9   : > { %v2235_v63 = vpop.permute.xlu0 %2234 }
 0xaaa   : > { %5282 = vmatpush3.msra.mxu1 %v2235_v63 }
 0xaab   : > { %5286 = vmatprep.subr.mxu1 %v5970_v20 }
 0xab0   : > { %v5659_v0 = vpop.eup %5658 }
 0xab1   : > { %v2232_v1 = vmul.f32 %v5659_v0, %v5655_v53 }
 0xab3   : > { %5284 = vmatmul.mubr.msk.f32.vlgmr.msra.gmra.mrb[32].mxu1 %vm1225_vm2, %v2232_v1 }
 0xab4   : > { %5287 = vmatpush3.msra.mxu1 %v2311_v51  ;;  %5288 = vmatprep.mubr.msk.f32.mxu1 %vm5971_vm0, %v5970_v20 }
 0xab5   : > { %5296 = vmatprep.subr.mxu1 %v5970_v20 }
 0xada   : > { %v2229_v2 = vpop.xlane.xlu0 %2228 }
 0xadb   : > { %5660 = vrcp.f32 %v2229_v2 }
 0xade   : > { %v2387_v3 = vpop.permute.xlu0 %2386 }
 0xadf   : > { %5294 = vmatmul.mubr.msk.f32.vlgmr.msra.gmra.mrb[8].mxu0 %vm1072_vm1, %v2387_v3 }
 0xae0   : > { %5303 = vmatprep.mubr.msk.f32.mxu0 %vm5971_vm0, %v5970_v20 }
 0xae5   : > { %v5661_v4 = vpop.eup %5660 }
 0xae6   : > { %v2233_v6 = vmul.f32 %v5661_v4, %v5657_v57 }
 0xae8   : > { %5289 = vmatmul.mubr.msk.f32.vlgmr.msra.gmra.mrb[34].mxu1 %vm1225_vm2, %v2233_v6 }
 0xae9   : > { %5297 = vmatpush3.xpose.msk.msra.mxu1 %vm1072_vm1, %v2467_v5  ;;  %5298 = vmatprep.mubr.msk.f32.mxu1 %vm5971_vm0, %v5970_v20 }
 0xaea   : > { %5306 = vmatprep.subr.mxu1 %v5970_v20 }
 0xaec   : > { %5299 = vmatmul.mubr.msk.f32.vlgmr.msra.gmra.mrb[36].mxu1 %vm1072_vm1, %v2465_v8 }
 0xaed   : > { %5308 = vmatprep.mubr.msk.f32.mxu1 %vm5971_vm0, %v5970_v20 }
 0xb86   : > { %v6648_v10 = vpop.f32.mrb[32].mxu1 }
 0xb87   : > { %v5285_v11 = vpop.f32.mrb[33].mxu1 }
 0xbb2   : > { %v2460_v12 = vpop.f32.mrb[8].mxu0 }
 0xbb3   : > { %v5295_v13 = vpop.f32.mrb[9].mxu0  ;;  %v2542_v14 = vsel %vm1225_vm2, %v2460_v12, -inf }
 0xbb4   : > { %2543 = vmax.xlane.f32.xlu0 %v2542_v14 }
 0xbbb   : > { %v6651_v15 = vpop.f32.mrb[34].mxu1 }
 0xbbc   : > { %v5493_v16 = vpack.i.bf16 %v6651_v15, %v6648_v10  ;;  %v5290_v17 = vpop.f32.mrb[35].mxu1 }
 0xbbf   : > { %v2538_v18 = vpop.f32.mrb[36].mxu1 }
 0xbc0   : > { %v5300_v19 = vpop.f32.mrb[37].mxu1  ;;  %v2545_v21 = vsel %vm1225_vm2, %v2538_v18, -inf }
 0xbc1   : > { %2546 = vmax.xlane.f32.xlu1 %v2545_v21 }
 0xbd2   : > { %2640 = vrot.lane.b32.xlu1 %v6507_v9, %s5975_s25 }
 0xbd6   : > { %2718 = vrot.lane.b32.xlu1 %v6454_v39, %s5976_s22 }
 0xbda   : > { %2796 = vrot.lane.b32.xlu1 %v6460_v42, %s5976_s22 }
 0xbde   : > { %2794 = vrot.lane.b32.xlu1 %v6465_v45, %s5976_s22 }
 0xc41   : > { %v2544_v23 = vpop.xlane.xlu0 %2543 }
 0xc42   : > { %v2548_v25 = vsub.f32 %v2460_v12, %v2544_v23 }
 0xc44   : > { %v2550_v26 = vmul.f32 1.442695, %v2548_v25 }
 0xc46   : > { %5662 = vpow2.f32 %v2550_v26 }
 0xc4e   : > { %v2547_v27 = vpop.xlane.xlu1 %2546 }
 0xc4f   : > { %v2549_v31 = vsub.f32 %v2538_v18, %v2547_v27 }
 0xc50   : > { %v5663_v28 = vpop.eup %5662 }
 0xc51   : > { %v2554_v29 = vsel %vm1225_vm2, %v5663_v28, 0.0  ;;  %v2552_v33 = vmul.f32 1.442695, %v2549_v31 }
 0xc52   : > { %v2641_v30 = vpop.permute.xlu1 %2640  ;;  %2555 = vadd.xlane.f32.xlu0 %v2554_v29 }
 0xc53   : > { %5307 = vmatpush3.msra.mxu1 %v2641_v30  ;;  %5664 = vpow2.f32 %v2552_v33 }
 0xc54   : > { %5316 = vmatprep.subr.mxu1 %v5970_v20 }
 0xc56   : > { %v2719_v46 = vpop.permute.xlu1 %2718 }
 0xc5a   : > { %v2797_v50 = vpop.permute.xlu1 %2796 }
 0xc5d   : > { %v5665_v36 = vpop.eup %5664 }
 0xc5e   : > { %v2557_v37 = vsel %vm1225_vm2, %v5665_v36, 0.0  ;;  %v2795_v52 = vpop.permute.xlu1 %2794 }
 0xc68   : > { %2564 = vrot.lane.b32.xlu0 %v6504_v7, %s5975_s25 }
 0xc87   : > { %2558 = vadd.xlane.f32.xlu0 %v2557_v37 }
 0xc9d   : > { %2716 = vrot.lane.b32.xlu0 %v6458_v41, %s5976_s22 }
 0xcdf   : > { %v2556_v38 = vpop.xlane.xlu0 %2555 }
 0xce0   : > { %5666 = vrcp.f32 %v2556_v38 }
 0xce3   : > { %v2565_v40 = vpop.permute.xlu0 %2564 }
 0xce4   : > { %5302 = vmatpush3.msra.mxu0 %v2565_v40 }
 0xce5   : > { %5311 = vmatprep.subr.mxu0 %v5970_v20 }
 0xcea   : > { %v5667_v43 = vpop.eup %5666 }
 0xceb   : > { %v2562_v44 = vmul.f32 %v5667_v43, %v5663_v28 }
 0xced   : > { %5304 = vmatmul.mubr.msk.f32.vlgmr.msra.gmra.mrb[10].mxu0 %vm1225_vm2, %v2562_v44 }
 0xcee   : > { %5312 = vmatpush3.xpose.msk.msra.mxu0 %vm1072_vm1, %v2719_v46  ;;  %5313 = vmatprep.mubr.msk.f32.mxu0 %vm5971_vm0, %v5970_v20 }
 0xcef   : > { %5321 = vmatprep.subr.mxu0 %v5970_v20 }
 0xd14   : > { %v2559_v47 = vpop.xlane.xlu0 %2558 }
 0xd15   : > { %5668 = vrcp.f32 %v2559_v47 }
 0xd18   : > { %v2717_v48 = vpop.permute.xlu0 %2716 }
 0xd19   : > { %5314 = vmatmul.mubr.msk.f32.vlgmr.msra.gmra.mrb[12].mxu0 %vm1072_vm1, %v2717_v48 }
 0xd1a   : > { %5323 = vmatprep.mubr.msk.f32.mxu0 %vm5971_vm0, %v5970_v20 }
 0xd1f   : > { %v5669_v49 = vpop.eup %5668 }
 0xd20   : > { %v2563_v51 = vmul.f32 %v5669_v49, %v5665_v36 }
 0xd22   : > { %5309 = vmatmul.mubr.msk.f32.vlgmr.msra.gmra.mrb[38].mxu1 %vm1225_vm2, %v2563_v51 }
 0xd23   : > { %5317 = vmatpush3.xpose.msk.msra.mxu1 %vm1072_vm1, %v2797_v50  ;;  %5318 = vmatprep.mubr.msk.f32.mxu1 %vm5971_vm0, %v5970_v20 }
 0xd24   : > { %5326 = vmatprep.subr.mxu1 %v5970_v20 }
 0xd26   : > { %5319 = vmatmul.mubr.msk.f32.vlgmr.msra.gmra.mrb[40].mxu1 %vm1072_vm1, %v2795_v52 }
 0xd27   : > { %5328 = vmatprep.mubr.msk.f32.mxu1 %vm5971_vm0, %v5970_v20 }
 0xdc0   : > { %v6688_v53 = vpop.f32.mrb[10].mxu0 }
 0xdc1   : > { %v5305_v54 = vpop.f32.mrb[11].mxu0 }
 0xdec   : > { %v2790_v55 = vpop.f32.mrb[12].mxu0 }
 0xded   : > { %v5315_v56 = vpop.f32.mrb[13].mxu0  ;;  %v2872_v57 = vsel %vm1225_vm2, %v2790_v55, -inf }
 0xdee   : > { %2873 = vmax.xlane.f32.xlu0 %v2872_v57 }
 0xdf5   : > { %v6691_v59 = vpop.f32.mrb[38].mxu1 }
 0xdf6   : > { %v5498_v62 = vpack.i.bf16 %v6691_v59, %v6688_v53  ;;  %v5310_v63 = vpop.f32.mrb[39].mxu1 }
 0xdf9   : > { %v2868_v0 = vpop.f32.mrb[40].mxu1 }
 0xdfa   : > { %v5320_v1 = vpop.f32.mrb[41].mxu1  ;;  %v2875_v2 = vsel %vm1225_vm2, %v2868_v0, -inf }
 0xdfb   : > { %2876 = vmax.xlane.f32.xlu1 %v2875_v2 }
 0xe0c   : > { %2970 = vrot.lane.b32.xlu1 %v6507_v9, %s5976_s22 }
 0xe10   : > { %3048 = vrot.lane.b32.xlu1 %v6454_v39, %s5977_s24 }
 0xe14   : > { %3126 = vrot.lane.b32.xlu1 %v6460_v42, %s5977_s24 }
 0xe18   : > { %3124 = vrot.lane.b32.xlu1 %v6465_v45, %s5977_s24 }
 0xe7b   : > { %v2874_v3 = vpop.xlane.xlu0 %2873 }
 0xe7c   : > { %v2878_v4 = vsub.f32 %v2790_v55, %v2874_v3 }
 0xe7e   : > { %v2880_v5 = vmul.f32 1.442695, %v2878_v4 }
 0xe80   : > { %5670 = vpow2.f32 %v2880_v5 }
 0xe88   : > { %v2877_v6 = vpop.xlane.xlu1 %2876 }
 0xe89   : > { %v2879_v13 = vsub.f32 %v2868_v0, %v2877_v6 }
 0xe8a   : > { %v5671_v8 = vpop.eup %5670 }
 0xe8b   : > { %v2884_v11 = vsel %vm1225_vm2, %v5671_v8, 0.0  ;;  %v2882_v14 = vmul.f32 1.442695, %v2879_v13 }
 0xe8c   : > { %v2971_v12 = vpop.permute.xlu1 %2970  ;;  %2885 = vadd.xlane.f32.xlu0 %v2884_v11 }
 0xe8d   : > { %5327 = vmatpush3.msra.mxu1 %v2971_v12  ;;  %5672 = vpow2.f32 %v2882_v14 }
 0xe8e   : > { %5336 = vmatprep.subr.mxu1 %v5970_v20 }
 0xe90   : > { %v3049_v26 = vpop.permute.xlu1 %3048 }
 0xe94   : > { %v3127_v30 = vpop.permute.xlu1 %3126 }
 0xe97   : > { %v5673_v17 = vpop.eup %5672 }
 0xe98   : > { %v2887_v18 = vsel %vm1225_vm2, %v5673_v17, 0.0  ;;  %v3125_v33 = vpop.permute.xlu1 %3124 }
 0xea2   : > { %2894 = vrot.lane.b32.xlu0 %v6504_v7, %s5976_s22 }
 0xec1   : > { %2888 = vadd.xlane.f32.xlu0 %v2887_v18 }
 0xed7   : > { %3046 = vrot.lane.b32.xlu0 %v6458_v41, %s5977_s24 }
 0xf19   : > { %v2886_v19 = vpop.xlane.xlu0 %2885 }
 0xf1a   : > { %5674 = vrcp.f32 %v2886_v19 }
 0xf1d   : > { %v2895_v21 = vpop.permute.xlu0 %2894 }
 0xf1e   : > { %5322 = vmatpush3.msra.mxu0 %v2895_v21 }
 0xf1f   : > { %5331 = vmatprep.subr.mxu0 %v5970_v20 }
 0xf24   : > { %v5675_v23 = vpop.eup %5674 }
 0xf25   : > { %v2892_v25 = vmul.f32 %v5675_v23, %v5671_v8 }
 0xf27   : > { %5324 = vmatmul.mubr.msk.f32.vlgmr.msra.gmra.mrb[14].mxu0 %vm1225_vm2, %v2892_v25 }
 0xf28   : > { %5332 = vmatpush3.xpose.msk.msra.mxu0 %vm1072_vm1, %v3049_v26  ;;  %5333 = vmatprep.mubr.msk.f32.mxu0 %vm5971_vm0, %v5970_v20 }
 0xf29   : > { %5341 = vmatprep.subr.mxu0 %v5970_v20 }
 0xf4e   : > { %v2889_v27 = vpop.xlane.xlu0 %2888 }
 0xf4f   : > { %5676 = vrcp.f32 %v2889_v27 }
 0xf52   : > { %v3047_v28 = vpop.permute.xlu0 %3046 }
 0xf53   : > { %5334 = vmatmul.mubr.msk.f32.vlgmr.msra.gmra.mrb[16].mxu0 %vm1072_vm1, %v3047_v28 }
 0xf54   : > { %5343 = vmatprep.mubr.msk.f32.mxu0 %vm5971_vm0, %v5970_v20 }
 0xf59   : > { %v5677_v29 = vpop.eup %5676 }
 0xf5a   : > { %v2893_v31 = vmul.f32 %v5677_v29, %v5673_v17 }
 0xf5c   : > { %5329 = vmatmul.mubr.msk.f32.vlgmr.msra.gmra.mrb[42].mxu1 %vm1225_vm2, %v2893_v31 }
 0xf5d   : > { %5337 = vmatpush3.xpose.msk.msra.mxu1 %vm1072_vm1, %v3127_v30  ;;  %5338 = vmatprep.mubr.msk.f32.mxu1 %vm5971_vm0, %v5970_v20 }
 0xf5e   : > { %5346 = vmatprep.subr.mxu1 %v5970_v20 }
 0xf60   : > { %5339 = vmatmul.mubr.msk.f32.vlgmr.msra.gmra.mrb[44].mxu1 %vm1072_vm1, %v3125_v33 }
 0xf61   : > { %5348 = vmatprep.mubr.msk.f32.mxu1 %vm5971_vm0, %v5970_v20 }
 0xffa   : > { %v6728_v36 = vpop.f32.mrb[14].mxu0 }
 0xffb   : > { %v5325_v37 = vpop.f32.mrb[15].mxu0 }
0x1026   : > { %v3120_v38 = vpop.f32.mrb[16].mxu0 }
0x1027   : > { %v5335_v40 = vpop.f32.mrb[17].mxu0  ;;  %v3202_v43 = vsel %vm1225_vm2, %v3120_v38, -inf }
0x1028   : > { %3203 = vmax.xlane.f32.xlu0 %v3202_v43  ;;  %v5544_v40 = vld [vmem:[%s6360_s2 + $0x10] sm:$0xff]   ;;  %v5545_v43 = vld [vmem:[%s6360_s2 + $0x18] sm:$0xff]  }
0x102f   : > { %v6731_v44 = vpop.f32.mrb[42].mxu1 }
0x1030   : > { %v5503_v46 = vpack.i.bf16 %v6731_v44, %v6728_v36  ;;  %v5330_v47 = vpop.f32.mrb[43].mxu1  ;;  %v5543_v36 = vld [vmem:[%s6360_s2 + $0x8] sm:$0xff]   ;;  %v5546_v44 = vld [vmem:[%s6360_s2 + $0x20] sm:$0xff]  }
0x1031   : > { %v5548_v47 = vld [vmem:[%s6360_s2 + $0x30] sm:$0xff]  }
0x1033   : > { %v3198_v48 = vpop.f32.mrb[44].mxu1 }
0x1034   : > { %v5340_v49 = vpop.f32.mrb[45].mxu1  ;;  %v3205_v50 = vsel %vm1225_vm2, %v3198_v48, -inf }
0x1035   : > { %3206 = vmax.xlane.f32.xlu1 %v3205_v50 }
0x1046   : > { %3300 = vrot.lane.b32.xlu1 %v6507_v9, %s5977_s24 }
0x104a   : > { %3378 = vrot.lane.b32.xlu1 %v6454_v39, %s5978_s23 }
0x104e   : > { %3456 = vrot.lane.b32.xlu1 %v6460_v42, %s5978_s23 }
0x1052   : > { %3454 = vrot.lane.b32.xlu1 %v6465_v45, %s5978_s23 }
0x10b5   : > { %v3204_v51 = vpop.xlane.xlu0 %3203 }
0x10b6   : > { %v3208_v52 = vsub.f32 %v3120_v38, %v3204_v51 }
0x10b8   : > { %v3210_v54 = vmul.f32 1.442695, %v3208_v52 }
0x10ba   : > { %5678 = vpow2.f32 %v3210_v54 }
0x10c2   : > { %v3207_v55 = vpop.xlane.xlu1 %3206 }
0x10c3   : > { %v3209_v39 = vsub.f32 %v3198_v48, %v3207_v55  ;;  %v5549_v48 = vld [vmem:[%s6360_s2 + $0x38] sm:$0xff]  }
0x10c4   : > { %v5679_v56 = vpop.eup %5678 }
0x10c5   : > { %v3214_v57 = vsel %vm1225_vm2, %v5679_v56, 0.0  ;;  %v3212_v42 = vmul.f32 1.442695, %v3209_v39 }
0x10c6   : > { %v3301_v63 = vpop.permute.xlu1 %3300  ;;  %3215 = vadd.xlane.f32.xlu0 %v3214_v57 }
0x10c7   : > { %5347 = vmatpush3.msra.mxu1 %v3301_v63  ;;  %5680 = vpow2.f32 %v3212_v42 }
0x10c8   : > { %5356 = vmatprep.subr.mxu1 %v5970_v20 }
0x10ca   : > { %v3379_v5 = vpop.permute.xlu1 %3378 }
0x10ce   : > { %v3457_v11 = vpop.permute.xlu1 %3456 }
0x10d1   : > { %v5681_v45 = vpop.eup %5680 }
0x10d2   : > { %v3217_v0 = vsel %vm1225_vm2, %v5681_v45, 0.0  ;;  %v3455_v13 = vpop.permute.xlu1 %3454 }
0x10dc   : > { %3224 = vrot.lane.b32.xlu0 %v6504_v7, %s5977_s24 }
0x10fb   : > { %3218 = vadd.xlane.f32.xlu0 %v3217_v0 }
0x1111   : > { %3376 = vrot.lane.b32.xlu0 %v6458_v41, %s5978_s23 }
0x1153   : > { %v3216_v1 = vpop.xlane.xlu0 %3215 }
0x1154   : > { %5682 = vrcp.f32 %v3216_v1 }
0x1157   : > { %v3225_v2 = vpop.permute.xlu0 %3224 }
0x1158   : > { %5342 = vmatpush3.msra.mxu0 %v3225_v2 }
0x1159   : > { %5351 = vmatprep.subr.mxu0 %v5970_v20 }
0x115e   : > { %v5683_v3 = vpop.eup %5682 }
0x115f   : > { %v3222_v4 = vmul.f32 %v5683_v3, %v5679_v56 }
0x1161   : > { %5344 = vmatmul.mubr.msk.f32.vlgmr.msra.gmra.mrb[18].mxu0 %vm1225_vm2, %v3222_v4 }
0x1162   : > { %5352 = vmatpush3.xpose.msk.msra.mxu0 %vm1072_vm1, %v3379_v5  ;;  %5353 = vmatprep.mubr.msk.f32.mxu0 %vm5971_vm0, %v5970_v20 }
0x1163   : > { %5361 = vmatprep.subr.mxu0 %v5970_v20 }
0x1188   : > { %v3219_v6 = vpop.xlane.xlu0 %3218 }
0x1189   : > { %5684 = vrcp.f32 %v3219_v6 }
0x118c   : > { %v3377_v41 = vpop.permute.xlu0 %3376 }
0x118d   : > { %5354 = vmatmul.mubr.msk.f32.vlgmr.msra.gmra.mrb[20].mxu0 %vm1072_vm1, %v3377_v41 }
0x118e   : > { %5363 = vmatprep.mubr.msk.f32.mxu0 %vm5971_vm0, %v5970_v20 }
0x1193   : > { %v5685_v8 = vpop.eup %5684 }
0x1194   : > { %v3223_v12 = vmul.f32 %v5685_v8, %v5681_v45 }
0x1196   : > { %5349 = vmatmul.mubr.msk.f32.vlgmr.msra.gmra.mrb[46].mxu1 %vm1225_vm2, %v3223_v12 }
0x1197   : > { %5357 = vmatpush3.xpose.msk.msra.mxu1 %vm1072_vm1, %v3457_v11  ;;  %5358 = vmatprep.mubr.msk.f32.mxu1 %vm5971_vm0, %v5970_v20 }
0x1198   : > { %5366 = vmatprep.subr.mxu1 %v5970_v20 }
0x119a   : > { %5359 = vmatmul.mubr.msk.f32.vlgmr.msra.gmra.mrb[48].mxu1 %vm1072_vm1, %v3455_v13 }
0x119b   : > { %5368 = vmatprep.mubr.msk.f32.mxu1 %vm5971_vm0, %v5970_v20 }
0x1234   : > { %v3296_v14 = vpop.f32.mrb[18].mxu0 }
0x1235   : > { %v5345_v17 = vpop.f32.mrb[19].mxu0 }
0x1260   : > { %v3450_v18 = vpop.f32.mrb[20].mxu0 }
0x1261   : > { %v5355_v19 = vpop.f32.mrb[21].mxu0  ;;  %v3532_v21 = vsel %vm1225_vm2, %v3450_v18, -inf }
0x1262   : > { %3533 = vmax.xlane.f32.xlu0 %v3532_v21 }
0x1269   : > { %v3372_v23 = vpop.f32.mrb[46].mxu1 }
0x126a   : > { %v5508_v25 = vpack.i.bf16 %v3372_v23, %v3296_v14  ;;  %v5350_v26 = vpop.f32.mrb[47].mxu1 }
0x126d   : > { %v3528_v27 = vpop.f32.mrb[48].mxu1 }
0x126e   : > { %v5360_v28 = vpop.f32.mrb[49].mxu1  ;;  %v3535_v29 = vsel %vm1225_vm2, %v3528_v27, -inf }
0x126f   : > { %3536 = vmax.xlane.f32.xlu1 %v3535_v29 }
0x1280   : > { %3630 = vrot.lane.b32.xlu1 %v6507_v9, %s5978_s23 }
0x1284   : > { %5484 = vrot.lane.b32.xlu1 %v5483_v61, %s5978_s23 }
0x1288   : > { %5489 = vrot.lane.b32.xlu1 %v5488_v35, %s5977_s24 }
0x128c   : > { %5499 = vrot.lane.b32.xlu1 %v5498_v62, %s5975_s25 }
0x1290   : > { %5509 = vrot.lane.b32.xlu1 %v5508_v25, %s5973_s1 }
0x12ef   : > { %v3534_v30 = vpop.xlane.xlu0 %3533 }
0x12f0   : > { %v3538_v31 = vsub.f32 %v3450_v18, %v3534_v30 }
0x12f2   : > { %v3540_v9 = vmul.f32 1.442695, %v3538_v31 }
0x12f4   : > { %5686 = vpow2.f32 %v3540_v9 }
0x12fc   : > { %v3537_v33 = vpop.xlane.xlu1 %3536 }
0x12fd   : > { %v3539_v37 = vsub.f32 %v3528_v27, %v3537_v33 }
0x12fe   : > { %v5687_v58 = vpop.eup %5686 }
0x12ff   : > { %v3542_v60 = vmul.f32 1.442695, %v3539_v37  ;;  %v3544_v61 = vsel %vm1225_vm2, %v5687_v58, 0.0 }
0x1300   : > { %v3631_v38 = vpop.permute.xlu1 %3630  ;;  %3545 = vadd.xlane.f32.xlu0 %v3544_v61 }
0x1301   : > { %5688 = vpow2.f32 %v3542_v60  ;;  %5367 = vmatpush3.msra.mxu1 %v3631_v38  ;;  %v5698_v60 = vld [vmem:[#allocation2] sm:$0xff]  ;;  %v5699_v38 = vld [vmem:[#allocation2 + $0x8] sm:$0xff] }
0x1304   : > { %v5485_v55 = vpop.permute.xlu1 %5484 }
0x1305   : > { %v5487_v63 = vunpack.i.h.bf16 %v5485_v55  ;;  %v5486_v39 = vunpack.i.l.bf16 %v5485_v55  ;;  %v5570_v55 = vld [vmem:[%s6366_s6 + $0x64] ss:$16 sps:$4 sm:$0xff]  }
0x1307   : > { %v3763_v3 = vsel %vm1072_vm1, %v6532_v24, %v5487_v63  ;;  %v3762_v4 = vsel %vm1072_vm1, %v6530_v22, %v5486_v39  ;;  %v5571_v63 = vld [vmem:[%s6366_s6 + $0x68] ss:$16 sps:$4 sm:$0xff]   ;;  %v5576_v39 = vld [vmem:[%s6366_s6 + $0x84] ss:$16 sps:$4 sm:$0xff]  }
0x1308   : > { %v5490_v56 = vpop.permute.xlu1 %5489 }
0x1309   : > { %v5492_v42 = vunpack.i.h.bf16 %v5490_v56  ;;  %v5491_v45 = vunpack.i.l.bf16 %v5490_v56  ;;  %v5573_v56 = vld [vmem:[%s6366_s6 + $0x6c] ss:$16 sps:$4 sm:$0xff]  }
0x130b   : > { %v5689_v32 = vpop.eup %5688  ;;  %v3765_v5 = vsel %vm3764_vm3, %v3762_v4, %v5491_v45  ;;  %v3766_v6 = vsel %vm3764_vm3, %v3763_v3, %v5492_v42  ;;  %v5579_v42 = vld [vmem:[%s6366_s6 + $0x8c] ss:$16 sps:$4 sm:$0xff]   ;;  %v5574_v45 = vld [vmem:[%s6366_s6 + $0x80] ss:$16 sps:$4 sm:$0xff]   ;;  %v5583_v3 = vld [vmem:[%s6366_s6 + $0xa8] ss:$16 sps:$4 sm:$0xff]  }
0x130c   : > { %v3547_v34 = vsel %vm1225_vm2, %v5689_v32, 0.0  ;;  %v5500_v0 = vpop.permute.xlu1 %5499  ;;  %v5588_v4 = vld [vmem:[%s6366_s6 + $0xc4] ss:$16 sps:$4 sm:$0xff]  }
0x130d   : > { %3548 = vadd.xlane.f32.xlu0 %v3547_v34  ;;  %v5502_v13 = vunpack.i.h.bf16 %v5500_v0  ;;  %v5501_v14 = vunpack.i.l.bf16 %v5500_v0  ;;  %v5577_v0 = vld [vmem:[%s6366_s6 + $0x88] ss:$16 sps:$4 sm:$0xff]  }
0x1310   : > { %v5510_v17 = vpop.permute.xlu1 %5509 }
0x1311   : > { %v5512_v24 = vunpack.i.h.bf16 %v5510_v17  ;;  %v5511_v25 = vunpack.i.l.bf16 %v5510_v17  ;;  %v5598_v17 = vld [vmem:[%s6368_s15 + $0x40] sm:$0xff]  }
0x1323   : > { %3554 = vrot.lane.b32.xlu0 %v6504_v7, %s5978_s23 }
0x1327   : > { %5494 = vrot.lane.b32.xlu0 %v5493_v16, %s5976_s22  ;;  %v5542_v16 = vld [vmem:[%s6360_s2] sm:$0xff]  }
0x132b   : > { %5504 = vrot.lane.b32.xlu0 %v5503_v46, %s5974_s30  ;;  %v5547_v46 = vld [vmem:[%s6360_s2 + $0x28] sm:$0xff]  }
0x138d   : > { %v3546_v35 = vpop.xlane.xlu0 %3545 }
0x138e   : > { %5690 = vrcp.f32 %v3546_v35 }
0x1398   : > { %v5691_v59 = vpop.eup %5690 }
0x1399   : > { %v3552_v62 = vmul.f32 %v5691_v59, %v5687_v58  ;;  %v5552_v59 = vld [vmem:[%s6366_s6 + $0x4] ss:$16 sps:$4 sm:$0xff]  }
0x139a   : > { %v3549_v53 = vpop.xlane.xlu0 %3548  ;;  %4137 = vmatprep.subr.bf16.mxu1 %v5552_v59  ;;  %v5611_v59 = vld [vmem:[%s6368_s15 + $0xd8] sm:$0xff]  }
0x139b   : > { %5692 = vrcp.f32 %v3549_v53  ;;  %v5550_v53 = vld [vmem:[%s6366_s6] ss:$16 sps:$4 sm:$0xff]  }
0x139e   : > { %v3555_v7 = vpop.permute.xlu0 %3554 }
0x139f   : > { %5362 = vmatpush3.msra.mxu0 %v3555_v7  ;;  %v5555_v7 = vld [vmem:[%s6366_s6 + $0xc] ss:$16 sps:$4 sm:$0xff]  }
0x13a0   : > { %5364 = vmatmul.mubr.msk.f32.vlgmr.msra.gmra.mrb[22].mxu0 %vm1225_vm2, %v3552_v62  ;;  %5371 = vmatprep.subr.bf16.mxu0 %v5970_v20  ;;  %v5553_v62 = vld [vmem:[%s6366_s6 + $0x8] ss:$16 sps:$4 sm:$0xff]  }
0x13a1   : > { %5387 = vmatprep.mubr.msk.bf16.mxu0 %vm5971_vm0, %v5970_v20  ;;  %5372 = vmatpush3.bf16.msra.mxu0 %v5542_v16  ;;  %v5556_v16 = vld [vmem:[%s6366_s6 + $0x20] ss:$16 sps:$4 sm:$0xff]  }
0x13a2   : > { %5373 = vmatprep.subr.bf16.mxu0 %v5970_v20  ;;  %v5495_v57 = vpop.permute.xlu0 %5494 }
0x13a3   : > { %v5497_v1 = vunpack.i.h.bf16 %v5495_v57 }
0x13a5   : > { %v5693_v10 = vpop.eup %5692  ;;  %5374 = vmatpush3.bf16.msra.mxu0 %v5543_v36  ;;  %v3769_v41 = vsel %vm3767_vm4, %v3766_v6, %v5497_v1  ;;  %v5559_v36 = vld [vmem:[%s6366_s6 + $0x28] ss:$16 sps:$4 sm:$0xff]   ;;  %v5582_v1 = vld [vmem:[%s6366_s6 + $0xa4] ss:$16 sps:$4 sm:$0xff]   ;;  %v5586_v6 = vld [vmem:[%s6366_s6 + $0xc0] ss:$16 sps:$4 sm:$0xff]  }
0x13a6   : > { %v3553_v15 = vmul.f32 %v5693_v10, %v5689_v32  ;;  %5375 = vmatprep.subr.bf16.mxu0 %v5970_v20  ;;  %v5505_v2 = vpop.permute.xlu0 %5504  ;;  %v3772_v19 = vsel %vm3770_vm5, %v3769_v41, %v5502_v13  ;;  %v5558_v10 = vld [vmem:[%s6366_s6 + $0x24] ss:$16 sps:$4 sm:$0xff]   ;;  %v5589_v41 = vld [vmem:[%s6366_s6 + $0xc8] ss:$16 sps:$4 sm:$0xff]  }
0x13a7   : > { %v5507_v11 = vunpack.i.h.bf16 %v5505_v2  ;;  %v5506_v12 = vunpack.i.l.bf16 %v5505_v2  ;;  %v5580_v2 = vld [vmem:[%s6366_s6 + $0xa0] ss:$16 sps:$4 sm:$0xff]   ;;  %v5595_v13 = vld [vmem:[%s6366_s6 + $0xe8] ss:$16 sps:$4 sm:$0xff]  }
0x13a8   : > { %5369 = vmatmul.mubr.msk.f32.vlgmr.msra.gmra.mrb[50].mxu1 %vm1225_vm2, %v3553_v15  ;;  %v5561_v15 = vld [vmem:[%s6366_s6 + $0x2c] ss:$16 sps:$4 sm:$0xff]  }
0x13a9   : > { %5376 = vmatpush3.bf16.msra.mxu0 %v5544_v40  ;;  %v3775_v23 = vsel %vm3773_vm6, %v3772_v19, %v5507_v11  ;;  %4138 = vmatpush1.bf16.msra.mxu1 %v5550_v53  ;;  %v5564_v40 = vld [vmem:[%s6366_s6 + $0x44] ss:$16 sps:$4 sm:$0xff]   ;;  %v5597_v11 = vld [vmem:[%s6366_s6 + $0xec] ss:$16 sps:$4 sm:$0xff]  }
0x13aa   : > { %5377 = vmatprep.subr.bf16.mxu0 %v5970_v20  ;;  %v3778_v29 = vsel %vm3776_vm7, %v3775_v23, %v5512_v24  ;;  %4139 = vmatprep.subr.bf16.mxu1 %v5558_v10  ;;  %v6861_v24 = vld [vmem:[%s689_s14] ss:$0 sm:$0xff]  ;;  %v5610_v53 = vld [vmem:[%s6368_s15 + $0x58] sm:$0xff]  }
0x13ab   : > { %v5614_v10 = vld [vmem:[%s6368_s15 + $0x60] sm:$0xff]  }
0x13ad   : > { %5378 = vmatpush3.bf16.msra.mxu0 %v5545_v43  ;;  %v5567_v43 = vld [vmem:[%s6366_s6 + $0x4c] ss:$16 sps:$4 sm:$0xff]   ;;  %4140 = vmatpush1.bf16.msra.mxu1 %v5556_v16  ;;  %v5616_v16 = vld [vmem:[%s6368_s15 + $0x20] sm:$0xff]  }
0x13ae   : > { %5379 = vmatprep.subr.bf16.mxu0 %v5970_v20  ;;  %4141 = vmatprep.subr.bf16.mxu1 %v5564_v40  ;;  %v5618_v40 = vld [vmem:[%s6368_s15 + $0x68] sm:$0xff]  }
0x13b1   : > { %5380 = vmatpush3.bf16.msra.mxu0 %v5546_v44  ;;  %v5562_v44 = vld [vmem:[%s6366_s6 + $0x40] ss:$16 sps:$4 sm:$0xff]  }
0x13b2   : > { %5381 = vmatprep.subr.bf16.mxu0 %v5970_v20  ;;  %4142 = vmatpush1.bf16.msra.mxu1 %v5562_v44  ;;  %v5620_v44 = vld [vmem:[%s6368_s15 + $0x28] sm:$0xff]  }
0x13b3   : > { %4143 = vmatprep.subr.bf16.mxu1 %v5570_v55  ;;  %v5629_v55 = vld [vmem:[%s6368_s15 + $0xb8] sm:$0xff]  }
0x13b5   : > { %5382 = vmatpush3.bf16.msra.mxu0 %v5547_v46  ;;  %v5565_v46 = vld [vmem:[%s6366_s6 + $0x48] ss:$16 sps:$4 sm:$0xff]  }
0x13b6   : > { %5383 = vmatprep.subr.bf16.mxu0 %v5970_v20 }
0x13b9   : > { %5384 = vmatpush3.bf16.msra.mxu0 %v5548_v47 }
0x13ba   : > { %5385 = vmatprep.subr.bf16.mxu0 %v5970_v20  ;;  %v5496_v20 = vunpack.i.l.bf16 %v5495_v57  ;;  %v5568_v57 = vld [vmem:[%s6366_s6 + $0x60] ss:$16 sps:$4 sm:$0xff]  }
0x13bb   : > { %4144 = vmatpush1.bf16.msra.mxu1 %v5568_v57 }
0x13bc   : > { %v3768_v8 = vsel %vm3767_vm4, %v3765_v5, %v5496_v20  ;;  %4145 = vmatprep.subr.bf16.mxu1 %v5576_v39  ;;  %v5585_v20 = vld [vmem:[%s6366_s6 + $0xac] ss:$16 sps:$4 sm:$0xff]  }
0x13bd   : > { %5386 = vmatpush3.bf16.msra.mxu0 %v5549_v48  ;;  %v3771_v18 = vsel %vm3770_vm5, %v3768_v8, %v5501_v14  ;;  %v5591_v5 = vld [vmem:[%s6366_s6 + $0xcc] ss:$16 sps:$4 sm:$0xff]   ;;  %v5594_v8 = vld [vmem:[%s6366_s6 + $0xe4] ss:$16 sps:$4 sm:$0xff]   ;;  %v5979_v14 = vmov 0  }
0x13be   : > { %v3774_v21 = vsel %vm3773_vm6, %v3771_v18, %v5506_v12  ;;  %4180 = vmatprep.subr.bf16.mxu0 %v5555_v7  ;;  %v5592_v12 = vld [vmem:[%s6366_s6 + $0xe0] ss:$16 sps:$4 sm:$0xff]   ;;  %4169 = vmatprep.mubr.bf16.mxu1 %v5979_v14  ;;  %v5613_v7 = vld [vmem:[%s6368_s15 + $0x98] sm:$0xff]  }
0x13bf   : > { %v3777_v28 = vsel %vm3776_vm7, %v3774_v21, %v5511_v25  ;;  %4146 = vmatpush1.bf16.msra.mxu1 %v5574_v45  ;;  %v5599_v18 = vld [vmem:[%s6368_s15 + $0xc0] sm:$0xff]  }
0x13c0   : > { %4147 = vmatprep.subr.bf16.mxu1 %v5582_v1 }
0x13c3   : > { %4148 = vmatpush1.bf16.msra.mxu1 %v5580_v2 }
0x13c4   : > { %4149 = vmatprep.subr.bf16.mxu1 %v5588_v4 }
0x13c7   : > { %4150 = vmatpush1.bf16.msra.mxu1 %v5586_v6 }
0x13c8   : > { %4151 = vmatprep.subr.bf16.mxu1 %v5594_v8 }
0x13cb   : > { %4152 = vmatpush1.bf16.msra.mxu1 %v5592_v12 }
0x13cc   : > { %5107 = vmatprep.subr.bf16.mxu1 %v5598_v17 }
0x1473   : > { %v3626_v49 = vpop.f32.mrb[22].mxu0 }
0x1474   : > { %v5365_v50 = vpop.f32.mrb[23].mxu0 }
0x147b   : > { %v3702_v51 = vpop.f32.mrb[50].mxu1 }
0x147c   : > { %v5513_v52 = vpack.i.bf16 %v3702_v51, %v3626_v49  ;;  %v5370_v54 = vpop.f32.mrb[51].mxu1 }
0x147e   : > { %5514 = vrot.lane.b32.xlu0 %v5513_v52, %s5972_s16 }
0x14f0   : > { %v5515_v22 = vpop.permute.xlu0 %5514 }
0x14f1   : > { %v5517_v26 = vunpack.i.h.bf16 %v5515_v22  ;;  %v5516_v27 = vunpack.i.l.bf16 %v5515_v22 }
0x14f3   : > { %v3781_v30 = vsel %vm3779_vm8, %v3778_v29, %v5517_v26  ;;  %v3780_v31 = vsel %vm3779_vm8, %v3777_v28, %v5516_v27  ;;  %v6869_v26 = vld [vmem:[%s692_s4] ss:$0 sm:$0xff]  ;;  %s7011_s4 = scalar_lea.vmem %s6969_s12, %s6376_s10 }
0x14f4   : > { %v3782_v9 = vpack.c.bf16 %v3781_v30, %v3780_v31  ;;  %v5600_v31 = vld [vmem:[%s6368_s15] sm:$0xff]  }
0x14f6   : > { %5388 = vmatmul.mubr.bf16.vlgmr.msra.gmra.mrb[24].mxu0 %v3782_v9  ;;  %v5601_v9 = vld [vmem:[%s6368_s15 + $0x80] sm:$0xff]  }
0x14f7   : > { %4181 = vmatpush1.bf16.msra.mxu0 %v5553_v62  ;;  %4212 = vmatprep.mubr.bf16.mxu0 %v5979_v14  ;;  %v5612_v62 = vld [vmem:[%s6368_s15 + $0x18] sm:$0xff]  }
0x14f8   : > { %4182 = vmatprep.subr.bf16.mxu0 %v5561_v15  ;;  %v5615_v15 = vld [vmem:[%s6368_s15 + $0xe0] sm:$0xff]  }
0x14fb   : > { %4183 = vmatpush1.bf16.msra.mxu0 %v5559_v36  ;;  %v5617_v36 = vld [vmem:[%s6368_s15 + $0xa0] sm:$0xff]  }
0x14fc   : > { %4184 = vmatprep.subr.bf16.mxu0 %v5567_v43  ;;  %v5619_v43 = vld [vmem:[%s6368_s15 + $0xe8] sm:$0xff]  }
0x14ff   : > { %4185 = vmatpush1.bf16.msra.mxu0 %v5565_v46  ;;  %v5621_v46 = vld [vmem:[%s6368_s15 + $0xa8] sm:$0xff]  }
0x1500   : > { %4186 = vmatprep.subr.bf16.mxu0 %v5573_v56  ;;  %v3957_v56 = vlaneseq }
0x1502   : > { %v3958_v57 = vshrl.u32 %v3957_v56, 7 }
0x1503   : > { %4187 = vmatpush1.bf16.msra.mxu0 %v5571_v63 }
0x1504   : > { %4188 = vmatprep.subr.bf16.mxu0 %v5579_v42  ;;  %v3959_v63 = vsub.s32 0, %v3958_v57  ;;  %v3967_v39 = vsub.s32 2, %v3958_v57  ;;  %v3955_v42 = vld [vmem:[%s6394_s0] sm:$0xf]  ;;  %v3963_v45 = vsub.s32 1, %v3958_v57 }
0x1506   : > { %v3960_v1 = vrot.slane %v3955_v42, %v3959_v63  ;;  %v3964_v2 = vrot.slane %v3955_v42, %v3963_v45 }
0x1507   : > { %4189 = vmatpush1.bf16.msra.mxu0 %v5577_v0  ;;  %v3971_v0 = vsub.s32 3, %v3958_v57 }
0x1508   : > { %4190 = vmatprep.subr.bf16.mxu0 %v5585_v20  ;;  %v3968_v20 = vrot.slane %v3955_v42, %v3967_v39 }
0x150b   : > { %4191 = vmatpush1.bf16.msra.mxu0 %v5583_v3  ;;  %v3972_v3 = vrot.slane %v3955_v42, %v3971_v0 }
0x150c   : > { %4192 = vmatprep.subr.bf16.mxu0 %v5591_v5 }
0x150f   : > { %4193 = vmatpush1.bf16.msra.mxu0 %v5589_v41 }
0x1510   : > { %4194 = vmatprep.subr.bf16.mxu0 %v5597_v11 }
0x1513   : > { %4195 = vmatpush1.bf16.msra.mxu0 %v5595_v13 }
0x1514   : > { %5129 = vmatprep.subr.bf16.mxu0 %v5599_v18 }
0x15c9   : > { %v3881_v33 = vpop.f32.mrb[24].mxu0 }
0x15ca   : > { %v5389_v37 = vpop.f32.mrb[25].mxu0  ;;  %v3888_v61 = vadd.f32 %v5698_v60, %v3881_v33  ;;  %v5604_v60 = vld [vmem:[%s6368_s15 + $0x8] sm:$0xff]  }
0x15cb   : > { %v3884_v58 = vpop.f32.mrb[26].mxu0  ;;  %v5602_v37 = vld [vmem:[%s6368_s15 + $0x48] sm:$0xff]  }
0x15cc   : > { %v3889_v32 = vadd.f32 %v5699_v38, %v3884_v58  ;;  %v5390_v34 = vpop.f32.mrb[27].mxu0  ;;  %v5603_v58 = vld [vmem:[%s6368_s15 + $0xc8] sm:$0xff]   ;;  %v5606_v38 = vld [vmem:[%s6368_s15 + $0x50] sm:$0xff]  }
0x15cd   : > { %v5608_v34 = vld [vmem:[%s6368_s15 + $0x10] sm:$0xff]  }
0x15ce   : > { %v3890_v35 = vadd.f32 %v3889_v32, %v3888_v61 }
0x15d0   : > { %3891 = vadd.xlane.f32.xlu1 %v3890_v35  ;;  %v5609_v35 = vld [vmem:[%s6368_s15 + $0x90] sm:$0xff]  }
0x165d   : > { %v3892_v47 = vpop.xlane.xlu1 %3891 }
0x165e   : > { %v3894_v48 = vmul.f32 0.00390625, %v3892_v47  ;;  %v5622_v47 = vld [vmem:[%s6368_s15 + $0x70] sm:$0xff]  }
0x1660   : > { %v3895_v49 = vsub.f32 %v3888_v61, %v3894_v48  ;;  %v3896_v50 = vsub.f32 %v3889_v32, %v3894_v48  ;;  %v5605_v61 = vld [vmem:[%s6368_s15 + $0x88] sm:$0xff]   ;;  %v5607_v32 = vld [vmem:[%s6368_s15 + $0xd0] sm:$0xff]  }
0x1661   : > { %v5623_v48 = vld [vmem:[%s6368_s15 + $0xf0] sm:$0xff]  }
0x1662   : > { %v3897_v51 = vmul.f32 %v3895_v49, %v3895_v49  ;;  %v3898_v52 = vmul.f32 %v3896_v50, %v3896_v50 }
0x1664   : > { %v3899_v54 = vadd.f32 %v3898_v52, %v3897_v51  ;;  %v5626_v51 = vld [vmem:[%s6368_s15 + $0x78] sm:$0xff]  }
0x1665   : > { %v5627_v52 = vld [vmem:[%s6368_s15 + $0xf8] sm:$0xff]  }
0x1666   : > { %3900 = vadd.xlane.f32.xlu0 %v3899_v54  ;;  %v5628_v54 = vld [vmem:[%s6368_s15 + $0x38] sm:$0xff]  }
0x16f3   : > { %v3901_v19 = vpop.xlane.xlu0 %3900 }
0x16f4   : > { %v3902_v21 = vmul.f32 0.00390625, %v3901_v19 }
0x16f6   : > { %v3903_v23 = vadd.f32 1e-05, %v3902_v21 }
0x16f8   : > { %5694 = vrsqrt.f32 %v3903_v23 }
0x1702   : > { %v5695_v25 = vpop.eup %5694 }
0x1703   : > { %v3911_v22 = vmul.f32 %v5695_v25, %v6861_v24 }
0x1705   : > { %v3912_v27 = vmul.f32 %v3911_v22, %v3895_v49  ;;  %v3913_v28 = vmul.f32 %v3911_v22, %v3896_v50  ;;  %v5624_v49 = vld [vmem:[%s6368_s15 + $0x30] sm:$0xff]  }
0x1706   : > { %v5625_v50 = vld [vmem:[%s6368_s15 + $0xb0] sm:$0xff]  }
0x1707   : > { %v6872_v29 = vadd.f32 %v6869_v26, %v3912_v27  ;;  %v6875_v30 = vadd.f32 %v6869_v26, %v3913_v28 }
0x1709   : > { %v3922_v33 = vpack.c.bf16 %v6875_v30, %v6872_v29 }
0x170b   : > { %4170 = vmatmul.mubr.bf16.vlgmr.msra.gmra.mrb[52].mxu1 %v3922_v33  ;;  %4213 = vmatmul.mubr.bf16.vlgmr.msra.gmra.mrb[28].mxu0 %v3922_v33 }
0x170c   : > { %5108 = vmatpush3.bf16.msra.mxu1 %v5600_v31  ;;  %5130 = vmatpush3.bf16.msra.mxu0 %v5601_v9 }
0x170d   : > { %5109 = vmatprep.subr.bf16.mxu1 %v5602_v37  ;;  %5131 = vmatprep.subr.bf16.mxu0 %v5603_v58 }
0x1710   : > { %5110 = vmatpush3.bf16.msra.mxu1 %v5604_v60  ;;  %5132 = vmatpush3.bf16.msra.mxu0 %v5605_v61 }
0x1711   : > { %5111 = vmatprep.subr.bf16.mxu1 %v5606_v38  ;;  %5133 = vmatprep.subr.bf16.mxu0 %v5607_v32 }
0x1714   : > { %5112 = vmatpush3.bf16.msra.mxu1 %v5608_v34  ;;  %5134 = vmatpush3.bf16.msra.mxu0 %v5609_v35 }
0x1715   : > { %5113 = vmatprep.subr.bf16.mxu1 %v5610_v53  ;;  %5135 = vmatprep.subr.bf16.mxu0 %v5611_v59  ;;  %v4963_v59 = vld [vmem:[%s7011_s4] ss:$0 sm:$0xff] }
0x1718   : > { %5114 = vmatpush3.bf16.msra.mxu1 %v5612_v62  ;;  %5136 = vmatpush3.bf16.msra.mxu0 %v5613_v7 }
0x1719   : > { %5115 = vmatprep.subr.bf16.mxu1 %v5614_v10  ;;  %5137 = vmatprep.subr.bf16.mxu0 %v5615_v15 }
0x171c   : > { %5116 = vmatpush3.bf16.msra.mxu1 %v5616_v16  ;;  %5138 = vmatpush3.bf16.msra.mxu0 %v5617_v36 }
0x171d   : > { %5117 = vmatprep.subr.bf16.mxu1 %v5618_v40  ;;  %5139 = vmatprep.subr.bf16.mxu0 %v5619_v43 }
0x1720   : > { %5118 = vmatpush3.bf16.msra.mxu1 %v5620_v44  ;;  %5140 = vmatpush3.bf16.msra.mxu0 %v5621_v46 }
0x1721   : > { %5119 = vmatprep.subr.bf16.mxu1 %v5622_v47  ;;  %5141 = vmatprep.subr.bf16.mxu0 %v5623_v48 }
0x1724   : > { %5120 = vmatpush3.bf16.msra.mxu1 %v5624_v49  ;;  %5142 = vmatpush3.bf16.msra.mxu0 %v5625_v50 }
0x1725   : > { %5121 = vmatprep.subr.bf16.mxu1 %v5626_v51  ;;  %5143 = vmatprep.subr.bf16.mxu0 %v5627_v52 }
0x1728   : > { %5122 = vmatpush3.bf16.msra.mxu1 %v5628_v54  ;;  %5144 = vmatpush3.bf16.msra.mxu0 %v5629_v55 }
0x17de   : > { %v4171_v4 = vpop.f32.mrb[52].mxu1  ;;  %v4214_v5 = vpop.f32.mrb[28].mxu0 }
0x17df   : > { %v4172_v6 = vadd.f32 %v4171_v4, %v3960_v1  ;;  %v4215_v41 = vadd.f32 %v4214_v5, %v3968_v20  ;;  %v4173_v8 = vpop.f32.mrb[53].mxu1  ;;  %v4216_v11 = vpop.f32.mrb[29].mxu0 }
0x17e0   : > { %v4174_v12 = vadd.f32 %v4173_v8, %v3964_v2  ;;  %v4217_v13 = vadd.f32 %v4216_v11, %v3972_v3  ;;  %v4175_v14 = vpop.f32.mrb[54].mxu1  ;;  %v4218_v17 = vpop.f32.mrb[30].mxu0 }
0x17e1   : > { %v4176_v18 = vadd.f32 %v4175_v14, %v3960_v1  ;;  %v4219_v19 = vadd.f32 %v4218_v17, %v3968_v20  ;;  %v4177_v21 = vpop.f32.mrb[55].mxu1  ;;  %v4220_v23 = vpop.f32.mrb[31].mxu0  ;;  %v4223_v27 = vmax.f32 %v4172_v6, 0.0  ;;  %v4225_v28 = vmax.f32 %v4215_v41, 0.0 }
0x17e2   : > { %v4178_v25 = vadd.f32 %v4177_v21, %v3964_v2  ;;  %v4221_v22 = vadd.f32 %v4220_v23, %v3972_v3  ;;  %v4224_v33 = vmax.f32 %v4174_v12, 0.0  ;;  %v4226_v37 = vmax.f32 %v4217_v13, 0.0 }
0x17e3   : > { %v4227_v31 = vmax.f32 %v4176_v18, 0.0  ;;  %v4229_v9 = vmax.f32 %v4219_v19, 0.0 }
0x17e4   : > { %v4228_v58 = vmax.f32 %v4178_v25, 0.0  ;;  %v4230_v60 = vmax.f32 %v4221_v22, 0.0 }
0x17e5   : > { %v4231_v61 = vpack.c.bf16 %v4227_v31, %v4223_v27  ;;  %v4233_v38 = vpack.c.bf16 %v4229_v9, %v4225_v28 }
0x17e6   : > { %v4232_v32 = vpack.c.bf16 %v4228_v58, %v4224_v33  ;;  %v4234_v34 = vpack.c.bf16 %v4230_v60, %v4226_v37 }
0x17e8   : > { %4530 = vmatprep.mubr.bf16.mxu1 %v4232_v32  ;;  %4571 = vmatprep.mubr.bf16.mxu0 %v4234_v34 }
0x17e9   : > { %4531 = vmatmul.mubr.bf16.vlgmr.msra.gmra.mrb[56].mxu1 %v4231_v61  ;;  %4572 = vmatmul.mubr.bf16.vlgmr.msra.gmra.mrb[32].mxu0 %v4233_v38 }
0x18bc   : > { %v5123_v35 = vpop.f32.mrb[56].mxu1  ;;  %v5145_v53 = vpop.f32.mrb[32].mxu0 }
0x18bd   : > { %v5124_v62 = vpop.f32.mrb[57].mxu1  ;;  %v5146_v7 = vpop.f32.mrb[33].mxu0 }
0x18be   : > { %v5125_v10 = vadd.f32 %v5124_v62, %v5123_v35  ;;  %v5147_v15 = vadd.f32 %v5146_v7, %v5145_v53  ;;  %v5126_v16 = vpop.f32.mrb[58].mxu1  ;;  %v5148_v36 = vpop.f32.mrb[34].mxu0 }
0x18bf   : > { %v5127_v40 = vpop.f32.mrb[59].mxu1  ;;  %v5149_v43 = vpop.f32.mrb[35].mxu0 }
0x18c0   : > { %v4533_v44 = vadd.f32 %v5125_v10, %v4963_v59  ;;  %v5128_v46 = vadd.f32 %v5127_v40, %v5126_v16  ;;  %v5150_v47 = vadd.f32 %v5149_v43, %v5148_v36 }
0x18c2   : > { %v4574_v48 = vadd.f32 %v5147_v15, %v4533_v44  ;;  %v4536_v49 = vadd.f32 %v5128_v46, %v4963_v59 }
0x18c4   : > { %v4577_v50 = vadd.f32 %v5150_v47, %v4536_v49  ;;  %v4580_v51 = vadd.f32 %v4574_v48, %v6872_v29 }
0x18c6   : > { %v4581_v52 = vadd.f32 %v4577_v50, %v6875_v30 }
0x18c8   : > { %v4582_v54 = vadd.f32 %v4581_v52, %v4580_v51 }
0x18ca   : > { %4583 = vadd.xlane.f32.xlu0 %v4582_v54 }
0x1957   : > { %v4584_v55 = vpop.xlane.xlu0 %4583 }
0x1958   : > { %v4585_v56 = vmul.f32 0.00390625, %v4584_v55 }
0x195a   : > { %v4586_v57 = vsub.f32 %v4580_v51, %v4585_v56  ;;  %v4587_v63 = vsub.f32 %v4581_v52, %v4585_v56 }
0x195c   : > { %v4588_v39 = vmul.f32 %v4586_v57, %v4586_v57  ;;  %v4589_v42 = vmul.f32 %v4587_v63, %v4587_v63 }
0x195e   : > { %v4590_v45 = vadd.f32 %v4589_v42, %v4588_v39 }
0x1960   : > { %4591 = vadd.xlane.f32.xlu0 %v4590_v45 }
0x19ed   : > { %v4592_v0 = vpop.xlane.xlu0 %4591 }
0x19ee   : > { %v4593_v1 = vmul.f32 0.00390625, %v4592_v0 }
0x19f0   : > { %v4594_v20 = vadd.f32 1e-05, %v4593_v1 }
0x19f2   : > { %5696 = vrsqrt.f32 %v4594_v20 }
0x19fc   : > { %v5697_v2 = vpop.eup %5696 }
0x19fd   : > { %v4596_v3 = vmul.f32 %v5697_v2, %v6861_v24  ;;  %4606 = sbr.rel (%p4996_p9) target bundleno = 6661 (0x1a05), region = 104 }
0x19ff   : > { %v4597_v29 = vmul.f32 %v4596_v3, %v4586_v57  ;;  %v4598_v4 = vmul.f32 %v4596_v3, %v4587_v63 }
0x1a01   : > { %v4599_v30 = vadd.f32 %v6869_v26, %v4597_v29  ;;  %v4600_v5 = vadd.f32 %v6869_v26, %v4598_v4 }
0x1a03   : > { %4601 = vst [vmem:[#allocation2] sm:$0xff] %v4599_v30  ;;  %4602 = vst [vmem:[#allocation2 + $0x8] sm:$0xff] %v4600_v5 }
0x1a04   : > { %4607 = vst [vmem:[#allocation14] sm:$0xff] %v4599_v30  ;;  %4608 = vst [vmem:[#allocation14 + $0x8] sm:$0xff] %v4600_v5 }
0x1a05 PF: > { %p5427_p0 = scmp.eq.s32.totalorder %s6072_s29, 2  ;;  %s5980_s10 = smov [#allocation14]  }
0x1a06   : > { %s4615_s0 = sshll.u32 %s5980_s10, 4  ;;  %s4616_s0 = int_to_ptr.vmem [resolvable:$true] %s4615_s0 }
0x1a07   : > { %s5880_s21 = scalar_lea.vmem %s4616_s0, 256  ;;  %p5887_p10 = scmp.lt.s32.totalorder %s4616_s0, %s4616_s0 }
0x1a08   : > { %p5881_p7 = scmp.ne.s32.totalorder %s4616_s0, %s5880_s21  ;;  %p5888_p5 = scmp.lt.s32.totalorder %s5880_s21, %s5880_s21 }
0x1a0a   : > { %p5882_p3 = pnand %p5881_p7, %p5427_p0  ;;  %p5889_p4 = por %p5888_p5, %p5887_p10 }
0x1a0c   : > { %p5883_p6 = pneg %p5882_p3 }
0x1a0e   : > { %p5890_p1 = pnand %p5889_p4, %p5883_p6 }
0x1a10   : > { %5893 = shalt.err (!%p5890_p1)
}
0x1a11   : > { %s7012_s20 = sld [smem:[#allocation29_spill]] }
0x1a17   : > { %s5894_s16 = scalar_lea.hbm %s7012_s20, 256 }
0x1a18   : > { %p5895_p11 = scmp.ne.s32.totalorder %s7012_s20, %s5894_s16  ;;  %p5900_p8 = scmp.lt.u32.totalorder %s5894_s16, %s7012_s20 }
0x1a1a   : > { %p5896_p12 = pnand %p5895_p11, %p5427_p0 }
0x1a1c   : > { %p5897_p13 = pneg %p5896_p12 }
0x1a1e   : > { %p5902_p2 = pnand %p5900_p8, %p5897_p13 }
0x1a20   : > { %5905 = shalt.err (!%p5902_p2)
}
0x1a21   : > { %s5981_s24 = smov 128   ;;  %s5982_s23 = smov 8  }
0x1a22   : > { %5404 = dma.vmem_to_hbm [thread:$0]  (%p5427_p0), %s4616_s0, 256, %s7012_s20, [#allocation5], %s5981_s24, %s5981_s24, %s5982_s23  }
0x1a23   : > { %5939 = dma.done.wait (%p5427_p0), [#allocation5], 256  }
0x1a24   : > { %5941 = vsyncadd (%p5427_p0), [#allocation5], 4294967040 }
0x1a25 PF: > { %s7013_s28 = sld [smem:[#allocation21_spill]]  ;;  %s7014_s17 = sld [smem:[#allocation20_spill]] }
0x1a26   : > { %s7015_s27 = sld [smem:[#allocation22_spill]]  ;;  %s7016_s25 = smov %s5948_s26 }
0x1a2b   : > { %p33_p9 = scmp.ge.s32.totalorder %s7013_s28, 5   ;;  %s7017_s26 = smov %s7014_s17 }
0x1a2d   :  { %35 = sbr.rel (!%p33_p9) target bundleno = 18 (0x12), region = 190 }
0x1a34   :  { %4631 = vsyncpa [#allocation4], 1 }
0x1a35   :  { %4633 = vsyncpa [#allocation4 + $0x1], 1 }
0x1a36   :  { %4634 = vsyncpa [#allocation7], 1 }
0x1a37   :  { %4636 = vsyncpa [#allocation7 + $0x1], 1 }
0x1a38   :  { %4637 = vsyncpa [#allocation10], 1 }
0x1a39   :  { %4639 = vsyncpa [#allocation10 + $0x1], 1 }
0x1a3a   :  { %4640 = vsyncpa [#allocation13], 1 }
0x1a3b   :  { %4642 = vsyncpa [#allocation13 + $0x1], 1 }
0x1a3c   :  { %4643 = vsyncpa [#allocation5], 1 }
0x1a3d   :  { %4645 = vsyncpa [#allocation5 + $0x1], 1 }

</bundles_post_ra>
